<compile_context>
chip_gen: v7x
topology: tpu7x:2x2x1
jax: 0.10.0
libtpu: 0.0.40
codegen_flags: <defaults>
</compile_context>

<pallas_src>
import functools

import jax
import jax.numpy as jnp
from jax.experimental import pallas as pl
from jax.experimental.pallas import tpu as pltpu

INPUT_DIM = 784
OUTPUT_DIM = 10
OUT_PAD = 128          # lane padding for the VMEM-resident weight only
TB_MAX = 2048          # max batch tile: ~13 MiB double-buffered f32 x footprint


def _linear_kernel(x_ref, wt_ref, b_ref, o_ref):
    # x_ref: [TB, IN], wt_ref: [IN, OUT_PAD], b_ref: [1, OUT], o_ref: [TB, OUT]
    out_dim = o_ref.shape[-1]
    x = x_ref[...].astype(wt_ref.dtype)            # in-VMEM cast; no extra HBM pass
    acc = jnp.dot(x, wt_ref[...],
                  preferred_element_type=jnp.float32,
                  precision=jax.lax.Precision.HIGHEST)
    o_ref[...] = (acc[:, :out_dim] + b_ref[...]).astype(o_ref.dtype)


def preprocess_params(weight, bias, param_dtype=jnp.float32):
    """One-time parameter packing (transpose + lane-pad weight + optional bf16 cast).

    weight: [OUT, IN] (PyTorch layout), bias: [OUT].
    Returns wt_packed: [IN, OUT_PAD] in param_dtype, b_packed: [1, OUT] f32.
    """
    out_dim, in_dim = weight.shape
    wt_packed = jnp.zeros((in_dim, OUT_PAD), param_dtype)
    wt_packed = wt_packed.at[:, :out_dim].set(weight.T.astype(param_dtype))
    b_packed = bias.astype(jnp.float32).reshape(1, out_dim)
    return wt_packed, b_packed


def _pick_tb(B, tb_max=TB_MAX):
    """Batch tile size: a multiple of 8 (or == B), capped at tb_max, chosen so
    the grid has >= 2 steps whenever possible (both v7x TensorCores engaged)."""
    if B <= 8:
        return B
    if B <= tb_max:
        half = pl.cdiv(B, 2)
        half = ((half + 7) // 8) * 8           # round up to a multiple of 8
        return half if half < B else B
    return tb_max


@functools.partial(jax.jit, static_argnames=("tb_max",))
def logistic_regression_forward(x, wt_packed, b_packed, *, tb_max=TB_MAX):
    """x: [B, IN]; wt_packed: [IN, OUT_PAD]; b_packed: [1, OUT] -> [B, OUT] f32."""
    B, IN = x.shape
    OUT = b_packed.shape[-1]
    TB = _pick_tb(B, tb_max)
    grid = (pl.cdiv(B, TB),)

    cost = pl.CostEstimate(
        flops=2 * B * IN * OUT_PAD,
        transcendentals=0,
        bytes_accessed=(B * IN * x.dtype.itemsize
                        + wt_packed.size * wt_packed.dtype.itemsize
                        + B * OUT * 4),
    )

    out = pl.pallas_call(
        _linear_kernel,
        out_shape=jax.ShapeDtypeStruct((B, OUT), jnp.float32),
        grid=grid,
        in_specs=[
            pl.BlockSpec((TB, IN), lambda i: (i, 0)),           # x streams over batch
            pl.BlockSpec(wt_packed.shape, lambda i: (0, 0)),    # weight VMEM-resident
            pl.BlockSpec(b_packed.shape, lambda i: (0, 0)),     # bias VMEM-resident
        ],
        out_specs=pl.BlockSpec((TB, OUT), lambda i: (i, 0)),    # unpadded (B, 10) output
        compiler_params=pltpu.CompilerParams(
            dimension_semantics=("parallel",),   # shard batch tiles across v7x's 2 TCs
            vmem_limit_bytes=32 << 20,           # footprint <= ~13 MiB; safe on v7x too
        ),
        cost_estimate=cost,
    )(x, wt_packed, b_packed)

    return out


if __name__ == "__main__":
    key = jax.random.PRNGKey(0)
    kx, kw, kb = jax.random.split(key, 3)

    # Deterministic parameter init mimicking torch.nn.Linear (uniform +-1/sqrt(IN)).
    bound = 1.0 / (INPUT_DIM ** 0.5)
    weight = jax.random.uniform(kw, (OUTPUT_DIM, INPUT_DIM), jnp.float32,
                                minval=-bound, maxval=bound)
    bias = jax.random.uniform(kb, (OUTPUT_DIM,), jnp.float32,
                              minval=-bound, maxval=bound)

    # --- f32 path, small batch (single grid step): exact PyTorch semantics ---
    batch = 8
    x = jax.random.normal(kx, (batch, INPUT_DIM), jnp.float32)
    wt_f32, b_f32 = preprocess_params(weight, bias, jnp.float32)
    out_f32 = jax.block_until_ready(logistic_regression_forward(x, wt_f32, b_f32))
    ref_f32 = x @ weight.T + bias
    assert out_f32.shape == (batch, OUTPUT_DIM)
    assert jnp.allclose(out_f32, ref_f32, atol=1e-4, rtol=1e-4)

    # --- multi-tile grid with a trailing partial block (masked writeback path) ---
    batch2 = 24                               # TB = 16 -> grid = 2, last block partial
    x2 = jax.random.normal(kx, (batch2, INPUT_DIM), jnp.float32)
    out2 = jax.block_until_ready(logistic_regression_forward(x2, wt_f32, b_f32))
    ref2 = x2 @ weight.T + bias
    assert out2.shape == (batch2, OUTPUT_DIM)
    assert jnp.allclose(out2, ref2, atol=1e-4, rtol=1e-4)

    # --- bf16 weight path (x cast in-VMEM inside the kernel; f32 accumulation) ---
    wt_bf16, b_bf16 = preprocess_params(weight, bias, jnp.bfloat16)
    out_bf16 = jax.block_until_ready(logistic_regression_forward(x, wt_bf16, b_bf16))
    ref_bf16 = jnp.dot(x.astype(jnp.bfloat16), weight.T.astype(jnp.bfloat16),
                       preferred_element_type=jnp.float32) + bias
    assert out_bf16.shape == (batch, OUTPUT_DIM)
    assert jnp.allclose(out_bf16, ref_bf16, atol=2e-2, rtol=2e-2)

    print("KERNEL_OK")
</pallas_src>

<mosaic_0001>
module attributes {stable_mosaic.version = 11 : i64} {
  func.func @_linear_kernel(%arg0: i32, %arg1: memref<8x784xf32, #tpu.memory_space<vmem>>, %arg2: memref<784x128xf32, #tpu.memory_space<vmem>>, %arg3: memref<1x10xf32, #tpu.memory_space<vmem>>, %arg4: memref<8x10xf32, #tpu.memory_space<vmem>>) attributes {dimension_semantics = [#tpu.dimension_semantics<parallel>], iteration_bounds = array<i64: 1>, scalar_prefetch = 0 : i64, scratch_operands = 0 : i64, tpu.core_type = #tpu.core_type<tc>, window_params = [{transform_indices = @transform_0, window_bounds = array<i64: 8, 784>}, {pipeline_mode = #tpu.pipeline_mode<synchronous>, transform_indices = @transform_1, window_bounds = array<i64: 784, 128>}, {pipeline_mode = #tpu.pipeline_mode<synchronous>, transform_indices = @transform_2, window_bounds = array<i64: 1, 10>}, {transform_indices = @transform_3, window_bounds = array<i64: 8, 10>}]} {
    %c0 = arith.constant 0 : index
    %c0_0 = arith.constant 0 : index
    %0 = vector.load %arg1[%c0, %c0_0] : memref<8x784xf32, #tpu.memory_space<vmem>>, vector<8x784xf32>
    %c0_1 = arith.constant 0 : index
    %c0_2 = arith.constant 0 : index
    %1 = vector.load %arg2[%c0_1, %c0_2] : memref<784x128xf32, #tpu.memory_space<vmem>>, vector<784x128xf32>
    %cst = arith.constant dense<0.000000e+00> : vector<8x128xf32>
    %2 = tpu.matmul %0, %1, %cst {dimension_numbers = #tpu.dot_dimension_numbers<[1], [0], [0], [1], [0, 0, 1, 1], [], []>, precision = #tpu.contract_precision<fp32>} : vector<8x784xf32>, vector<784x128xf32>, vector<8x128xf32> -> vector<8x128xf32>
    %3 = vector.extract_strided_slice %2 {offsets = [0, 0], sizes = [8, 10], strides = [1, 1]} : vector<8x128xf32> to vector<8x10xf32>
    %c0_3 = arith.constant 0 : index
    %c0_4 = arith.constant 0 : index
    %4 = vector.load %arg3[%c0_3, %c0_4] : memref<1x10xf32, #tpu.memory_space<vmem>>, vector<1x10xf32>
    %5 = vector.broadcast %4 : vector<1x10xf32> to vector<8x10xf32>
    %6 = arith.addf %3, %5 : vector<8x10xf32>
    %c0_5 = arith.constant 0 : index
    %c0_6 = arith.constant 0 : index
    %7 = vector.load %arg4[%c0_5, %c0_6] : memref<8x10xf32, #tpu.memory_space<vmem>>, vector<8x10xf32>
    tpu.vector_store %arg4[%c0_5, %c0_6], %6 {strides = array<i32>} : memref<8x10xf32, #tpu.memory_space<vmem>>, vector<8x10xf32>,
    return
  }
  func.func @transform_0(%arg0: i32) -> (i32, i32) {
    %c0_i32 = arith.constant 0 : i32
    %c0_i32_0 = arith.constant 0 : i32
    return %arg0, %c0_i32 : i32, i32
  }
  func.func @transform_1(%arg0: i32) -> (i32, i32) {
    %c0_i32 = arith.constant 0 : i32
    %c0_i32_0 = arith.constant 0 : i32
    %c0_i32_1 = arith.constant 0 : i32
    return %c0_i32, %c0_i32_0 : i32, i32
  }
  func.func @transform_2(%arg0: i32) -> (i32, i32) {
    %c0_i32 = arith.constant 0 : i32
    %c0_i32_0 = arith.constant 0 : i32
    %c0_i32_1 = arith.constant 0 : i32
    return %c0_i32, %c0_i32_0 : i32, i32
  }
  func.func @transform_3(%arg0: i32) -> (i32, i32) {
    %c0_i32 = arith.constant 0 : i32
    %c0_i32_0 = arith.constant 0 : i32
    return %arg0, %c0_i32 : i32, i32
  }
}

</mosaic_0001>

<bundles_post_ra>
// kernel: logistic_regression_forward.1
= control target key start
LH: loop header
LB: loop body
LE: loop exit
PB: predicated region body
PF: predicated region fallthrough
CT: control target
= control target key end

     0   :  { %8 = vsyncpa [#allocation3], 0  ;;  %s6001_s0 = inlined_call_operand.hbm [shape: f32[8,784], index: 0, kind: input, shape index: {}]   ;;  %s6002_s1 = inlined_call_operand.hbm [shape: f32[784,128], index: 1, kind: input, shape index: {}]   ;;  %s6003_s2 = inlined_call_operand.vmem [shape: f32[1,10], index: 2, kind: input, shape index: {}]   ;;  %s6004_s3 = inlined_call_operand.hbm [shape: f32[8,10], index: 3, kind: output, shape index: {}]  }
   0x1   :  { %9 = vsyncpa [#allocation6], 0 }
   0x2   :  { %10 = vsyncpa [#allocation4], 0  ;;  %s4586_s12 = smov [#allocation2]   ;;  %s4587_s14 = smov [#allocation5]  }
   0x3   :  { %s17_s13 = sshll.u32 %s4586_s12, 4  ;;  %s26_s15 = sshll.u32 %s4587_s14, 4  ;;  %s18_s13 = int_to_ptr.vmem [resolvable:$true] %s17_s13  ;;  %s4614_s15 = int_to_ptr.vmem [resolvable:$true] %s26_s15 }
   0x4   :  { %s4514_s18 = scalar_lea.hbm %s6001_s0, 896 }
   0x5   :  { %p4515_p0 = scmp.ne.s32.totalorder %s6001_s0, %s4514_s18  ;;  %p4518_p1 = scmp.lt.u32.totalorder %s4514_s18, %s6001_s0 }
   0x7   :  { %p4520_p2 = pnand %p4518_p1, %p4515_p0 }
   0x9   :  { %4523 = shalt.err (!%p4520_p2)
}
   0xa   :  { %s4524_s23 = scalar_lea.vmem %s18_s13, 896  ;;  %p4529_p4 = scmp.lt.s32.totalorder %s18_s13, %s18_s13 }
   0xb   :  { %p4525_p3 = scmp.ne.s32.totalorder %s18_s13, %s4524_s23  ;;  %p4530_p5 = scmp.lt.s32.totalorder %s4524_s23, %s4524_s23 }
   0xd   :  { %p4531_p6 = por %p4530_p5, %p4529_p4 }
   0xf   :  { %p4532_p7 = pnand %p4531_p6, %p4525_p3 }
  0x11   :  { %4535 = shalt.err (!%p4532_p7)
}
  0x12   :  { %20 = dma.hbm_to_vmem [thread:$0]  %s6001_s0, 896, %s18_s13, [#allocation3]  }
  0x13   :  { %s4536_s28 = scalar_lea.hbm %s6002_s1, 12544 }
  0x14   :  { %p4537_p8 = scmp.ne.s32.totalorder %s6002_s1, %s4536_s28  ;;  %p4540_p9 = scmp.lt.u32.totalorder %s4536_s28, %s6002_s1 }
  0x16   :  { %p4542_p10 = pnand %p4540_p9, %p4537_p8 }
  0x18   :  { %4545 = shalt.err (!%p4542_p10)
}
  0x19   :  { %s4546_s6 = scalar_lea.vmem %s4614_s15, 12544  ;;  %p4551_p12 = scmp.lt.s32.totalorder %s4614_s15, %s4614_s15 }
  0x1a   :  { %p4547_p11 = scmp.ne.s32.totalorder %s4614_s15, %s4546_s6  ;;  %p4552_p13 = scmp.lt.s32.totalorder %s4546_s6, %s4546_s6 }
  0x1c   :  { %p4553_p0 = por %p4552_p13, %p4551_p12 }
  0x1e   :  { %p4554_p1 = pnand %p4553_p0, %p4547_p11 }
  0x20   :  { %4557 = shalt.err (!%p4554_p1)
}
  0x21   :  { %s4588_s0 = smov 128   ;;  %s4589_s7 = smov 8  }
  0x22   :  { %32 = dma.hbm_to_vmem [thread:$0]  %s6002_s1, 12544, %s4614_s15, [#allocation6], %s4588_s0, %s4588_s0, %s4589_s7  }
  0x23   :  { %4580 = dma.done.wait [#allocation3], 896  }
  0x24   :  { %4581 = vsyncadd [#allocation3], 4294966400 }
  0x25   :  { %4582 = dma.done.wait [#allocation6], 12544  }
  0x26   :  { %4583 = vsyncadd [#allocation6], 4294954752  ;;  %v64_v0 = vld [vmem:[#allocation5 + $0x80] sm:$0xff]  ;;  %v65_v1 = vld [vmem:[#allocation5 + $0x88] sm:$0xff]  ;;  %vm146_vm0 = vcmask 130048   ;;  %vm4591_vm1 = vmmov 0  }
  0x27   :  { %v48_v2 = vld [vmem:[#allocation5] sm:$0xff]  ;;  %v199_v3 = vand.u32 4294901760, %v64_v0  ;;  %v202_v4 = vand.u32 4294901760, %v65_v1  ;;  %v49_v5 = vld [vmem:[#allocation5 + $0x8] sm:$0xff]  ;;  %v66_v7 = vld [vmem:[#allocation5 + $0x90] sm:$0xff]  ;;  %s4593_s11 = smov [#allocation7]  }
  0x28   :  { %v151_v6 = vand.u32 4294901760, %v48_v2  ;;  %v67_v8 = vld [vmem:[#allocation5 + $0x98] sm:$0xff]  ;;  %v154_v9 = vand.u32 4294901760, %v49_v5  ;;  %v205_v10 = vand.u32 4294901760, %v66_v7  ;;  %v50_v12 = vld [vmem:[#allocation5 + $0x10] sm:$0xff]  ;;  %v68_v18 = vld [vmem:[#allocation5 + $0xa0] sm:$0xff] }
  0x29   :  { %v208_v11 = vand.u32 4294901760, %v67_v8  ;;  %v51_v13 = vld [vmem:[#allocation5 + $0x18] sm:$0xff]  ;;  %v4645_v14 = vpack.c.bf16 %v202_v4, %v199_v3  ;;  %v157_v16 = vand.u32 4294901760, %v50_v12  ;;  %v69_v19 = vld [vmem:[#allocation5 + $0xa8] sm:$0xff]  ;;  %v52_v23 = vld [vmem:[#allocation5 + $0x20] sm:$0xff]  ;;  %v211_v29 = vand.u32 4294901760, %v68_v18 }
  0x2a   :  { %v4647_v15 = vsub.f32 %v48_v2, %v151_v6  ;;  %v160_v17 = vand.u32 4294901760, %v51_v13  ;;  %v4649_v20 = vpack.c.bf16 %v154_v9, %v151_v6  ;;  %v4651_v21 = vsub.f32 %v49_v5, %v154_v9  ;;  %v53_v24 = vld [vmem:[#allocation5 + $0x28] sm:$0xff]  ;;  %v70_v37 = vld [vmem:[#allocation5 + $0xb0] sm:$0xff]  ;;  %v71_v42 = vld [vmem:[#allocation5 + $0xb8] sm:$0xff]  ;;  %s3211_s12 = sshll.u32 %s4593_s11, 4  ;;  %s3212_s12 = int_to_ptr.vmem [resolvable:$true] %s3211_s12 }
  0x2b   :  { %v4653_v22 = vpack.c.bf16 %v208_v11, %v205_v10  ;;  %3913 = vmatprep.subr.bf16.mxu0 %v4645_v14  ;;  %v4656_v25 = vsub.f32 %v66_v7, %v205_v10  ;;  %v4658_v26 = vsub.f32 %v67_v8, %v208_v11  ;;  %v4662_v28 = vsub.f32 %v50_v12, %v157_v16  ;;  %v54_v55 = vld [vmem:[#allocation5 + $0x30] sm:$0xff]  ;;  %v55_v56 = vld [vmem:[#allocation5 + $0x38] sm:$0xff]  ;;  %v72_v5 = vld [vmem:[#allocation5 + $0xc0] sm:$0xff]  ;;  %s4558_s13 = scalar_lea.vmem %s3212_s12, 128  ;;  %p4563_p3 = scmp.lt.s32.totalorder %s3212_s12, %s3212_s12 }
  0x2c   :  { %v4660_v27 = vpack.c.bf16 %v160_v17, %v157_v16  ;;  %3915 = vmatpush3.bf16.msra.mxu0 %v4649_v20  ;;  %v214_v30 = vand.u32 4294901760, %v69_v19  ;;  %v4665_v31 = vsub.f32 %v64_v0, %v199_v3  ;;  %v4667_v32 = vsub.f32 %v65_v1, %v202_v4  ;;  %v73_v6 = vld [vmem:[#allocation5 + $0xc8] sm:$0xff]  ;;  %v56_v11 = vld [vmem:[#allocation5 + $0x40] sm:$0xff]  ;;  %p4559_p2 = scmp.ne.s32.totalorder %s3212_s12, %s4558_s13  ;;  %p4564_p4 = scmp.lt.s32.totalorder %s4558_s13, %s4558_s13 }
  0x2d   :  { %3917 = vmatprep.subr.bf16.mxu0 %v4653_v22  ;;  %v163_v33 = vand.u32 4294901760, %v52_v23  ;;  %v166_v34 = vand.u32 4294901760, %v53_v24  ;;  %v6020_v35 = vand.u32 4294901760, %v4647_v15  ;;  %v6019_v36 = vand.u32 4294901760, %v4651_v21 }
  0x2e   :  { %v4672_v38 = vsub.f32 %v51_v13, %v160_v17  ;;  %v4674_v39 = vpack.c.bf16 %v214_v30, %v211_v29  ;;  %v4676_v40 = vsub.f32 %v68_v18, %v211_v29  ;;  %v6024_v41 = vand.u32 4294901760, %v4665_v31  ;;  %v57_v29 = vld [vmem:[#allocation5 + $0x48] sm:$0xff]  ;;  %p4565_p5 = por %p4564_p4, %p4563_p3 }
  0x2f   :  { %v4679_v43 = vsub.f32 %v69_v19, %v214_v30  ;;  %v6022_v44 = vand.u32 4294901760, %v4667_v32  ;;  %v4682_v45 = vpack.c.bf16 %v166_v34, %v163_v33  ;;  %v4684_v46 = vsub.f32 %v52_v23, %v163_v33 }
  0x30   :  { %3919 = vmatpush3.bf16.msra.mxu0 %v4660_v27  ;;  %v378_v47 = vsub.f32 %v4665_v31, %v6024_v41  ;;  %v266_v48 = vsub.f32 %v4647_v15, %v6020_v35  ;;  %v273_v49 = vsub.f32 %v4651_v21, %v6019_v36  ;;  %v217_v50 = vand.u32 4294901760, %v70_v37  ;;  %v42_v41 = vld [vmem:[#allocation2 + $0x8] sm:$0xff]  ;;  %p4566_p6 = pnand %p4565_p5, %p4559_p2 }
  0x31   :  { %3921 = vmatprep.subr.bf16.mxu0 %v4674_v39  ;;  %v385_v51 = vsub.f32 %v4667_v32, %v6022_v44  ;;  %v220_v52 = vand.u32 4294901760, %v71_v42  ;;  %v6017_v53 = vand.u32 4294901760, %v4656_v25  ;;  %v6015_v54 = vand.u32 4294901760, %v4658_v26 }
  0x32   :  { %v379_v57 = vand.u32 4294901760, %v378_v47  ;;  %v4702_v58 = vsub.f32 %v53_v24, %v166_v34  ;;  %v267_v59 = vand.u32 4294901760, %v266_v48  ;;  %v274_v60 = vand.u32 4294901760, %v273_v49 }
  0x33   :  { %v386_v61 = vand.u32 4294901760, %v385_v51  ;;  %v4704_v62 = vpack.c.bf16 %v220_v52, %v217_v50  ;;  %v4706_v63 = vsub.f32 %v70_v37, %v217_v50  ;;  %v392_v0 = vsub.f32 %v4656_v25, %v6017_v53 }
  0x34   :  { %3923 = vmatpush3.bf16.msra.mxu0 %v4682_v45  ;;  %v3946_v1 = vpack.c.bf16 %v274_v60, %v267_v59  ;;  %v399_v2 = vsub.f32 %v4658_v26, %v6015_v54  ;;  %v169_v3 = vand.u32 4294901760, %v54_v55  ;;  %v172_v4 = vand.u32 4294901760, %v55_v56  ;;  %v75_v59 = vld [vmem:[#allocation5 + $0xd8] sm:$0xff] }
  0x35   :  { %v3944_v7 = vpack.c.bf16 %v386_v61, %v379_v57  ;;  %3925 = vmatprep.subr.bf16.mxu0 %v4704_v62  ;;  %v393_v8 = vand.u32 4294901760, %v392_v0  ;;  %v6014_v9 = vand.u32 4294901760, %v4662_v28  ;;  %v6012_v10 = vand.u32 4294901760, %v4672_v38  ;;  %v74_v57 = vld [vmem:[#allocation5 + $0xd0] sm:$0xff]  ;;  %v79_v54 = vld [vmem:[#allocation5 + $0xf8] sm:$0xff] }
  0x36   :  { %v4718_v12 = vsub.f32 %v71_v42, %v220_v52  ;;  %v400_v13 = vand.u32 4294901760, %v399_v2  ;;  %v4720_v16 = vpack.c.bf16 %v172_v4, %v169_v3  ;;  %v4722_v17 = vsub.f32 %v54_v55, %v169_v3 }
  0x37   :  { %3945 = vmatprep.subr.bf16.mxu1 %v3944_v7  ;;  %v280_v18 = vsub.f32 %v4662_v28, %v6014_v9  ;;  %v287_v19 = vsub.f32 %v4672_v38, %v6012_v10  ;;  %v223_v23 = vand.u32 4294901760, %v72_v5  ;;  %v226_v24 = vand.u32 4294901760, %v73_v6  ;;  %v78_v9 = vld [vmem:[#allocation5 + $0xf0] sm:$0xff] }
  0x38   :  { %3947 = vmatpush3.bf16.msra.mxu1 %v3946_v1  ;;  %v3948_v30 = vpack.c.bf16 %v400_v13, %v393_v8  ;;  %3927 = vmatpush3.bf16.msra.mxu0 %v4720_v16  ;;  %v6010_v33 = vand.u32 4294901760, %v4676_v40  ;;  %v6009_v34 = vand.u32 4294901760, %v4679_v43  ;;  %v175_v37 = vand.u32 4294901760, %v56_v11  ;;  %v58_v1 = vld [vmem:[#allocation5 + $0x50] sm:$0xff] }
  0x39   :  { %v4733_v42 = vsub.f32 %v55_v56, %v172_v4  ;;  %v281_v47 = vand.u32 4294901760, %v280_v18  ;;  %v288_v48 = vand.u32 4294901760, %v287_v19  ;;  %v4735_v49 = vpack.c.bf16 %v226_v24, %v223_v23  ;;  %v59_v18 = vld [vmem:[#allocation5 + $0x58] sm:$0xff] }
  0x3a   :  { %3949 = vmatprep.subr.bf16.mxu1 %v3948_v30  ;;  %v4737_v50 = vsub.f32 %v72_v5, %v223_v23  ;;  %v406_v51 = vsub.f32 %v4676_v40, %v6010_v33  ;;  %v413_v52 = vsub.f32 %v4679_v43, %v6009_v34  ;;  %v178_v55 = vand.u32 4294901760, %v57_v29 }
  0x3b   :  { %v3950_v56 = vpack.c.bf16 %v288_v48, %v281_v47  ;;  %3929 = vmatprep.subr.bf16.mxu0 %v4735_v49  ;;  %v4746_v60 = vsub.f32 %v73_v6, %v226_v24  ;;  %v6007_v61 = vand.u32 4294901760, %v4684_v46  ;;  %v6005_v0 = vand.u32 4294901760, %v4702_v58 }
  0x3c   :  { %v407_v2 = vand.u32 4294901760, %v406_v51  ;;  %v414_v3 = vand.u32 4294901760, %v413_v52  ;;  %v4750_v4 = vpack.c.bf16 %v178_v55, %v175_v37  ;;  %v4752_v5 = vsub.f32 %v56_v11, %v175_v37 }
  0x3d   :  { %3951 = vmatpush3.bf16.msra.mxu1 %v3950_v56  ;;  %v294_v7 = vsub.f32 %v4684_v46, %v6007_v61  ;;  %v301_v6 = vsub.f32 %v4702_v58, %v6005_v0  ;;  %v229_v8 = vand.u32 4294901760, %v74_v57  ;;  %v232_v13 = vand.u32 4294901760, %v75_v59  ;;  %v77_v0 = vld [vmem:[#allocation5 + $0xe8] sm:$0xff] }
  0x3e   :  { %v3952_v19 = vpack.c.bf16 %v414_v3, %v407_v2  ;;  %3931 = vmatpush3.bf16.msra.mxu0 %v4750_v4  ;;  %v6006_v23 = vand.u32 4294901760, %v4706_v63  ;;  %v6008_v11 = vand.u32 4294901760, %v4718_v12  ;;  %v181_v24 = vand.u32 4294901760, %v58_v1  ;;  %v76_v3 = vld [vmem:[#allocation5 + $0xe0] sm:$0xff] }
  0x3f   :  { %v4763_v30 = vsub.f32 %v57_v29, %v178_v55  ;;  %v295_v37 = vand.u32 4294901760, %v294_v7  ;;  %v302_v47 = vand.u32 4294901760, %v301_v6  ;;  %v4765_v48 = vpack.c.bf16 %v232_v13, %v229_v8  ;;  %v60_v6 = vld [vmem:[#allocation5 + $0x60] sm:$0xff] }
  0x40   :  { %3953 = vmatprep.subr.bf16.mxu1 %v3952_v19  ;;  %v4767_v51 = vsub.f32 %v74_v57, %v229_v8  ;;  %v420_v52 = vsub.f32 %v4706_v63, %v6006_v23  ;;  %v427_v56 = vsub.f32 %v4718_v12, %v6008_v11  ;;  %v184_v2 = vand.u32 4294901760, %v59_v18  ;;  %v61_v11 = vld [vmem:[#allocation5 + $0x68] sm:$0xff] }
  0x41   :  { %v3954_v29 = vpack.c.bf16 %v302_v47, %v295_v37  ;;  %3933 = vmatprep.subr.bf16.mxu0 %v4765_v48  ;;  %v4776_v55 = vsub.f32 %v75_v59, %v232_v13  ;;  %v6011_v7 = vand.u32 4294901760, %v4722_v17  ;;  %v6013_v57 = vand.u32 4294901760, %v4733_v42 }
  0x42   :  { %v421_v8 = vand.u32 4294901760, %v420_v52  ;;  %v428_v19 = vand.u32 4294901760, %v427_v56  ;;  %v4780_v23 = vpack.c.bf16 %v184_v2, %v181_v24  ;;  %v4782_v61 = vsub.f32 %v58_v1, %v181_v24 }
  0x43   :  { %3955 = vmatpush3.bf16.msra.mxu1 %v3954_v29  ;;  %v308_v37 = vsub.f32 %v4722_v17, %v6011_v7  ;;  %v315_v59 = vsub.f32 %v4733_v42, %v6013_v57  ;;  %v235_v13 = vand.u32 4294901760, %v76_v3  ;;  %v238_v47 = vand.u32 4294901760, %v77_v0 }
  0x44   :  { %6140 = vst [vmem:[#allocation11_spill] sm:$0xff] %v4780_v23  ;;  %v3956_v34 = vpack.c.bf16 %v428_v19, %v421_v8  ;;  %3935 = vmatpush3.bf16.msra.mxu0 %v4780_v23  ;;  %v6016_v52 = vand.u32 4294901760, %v4737_v50  ;;  %v6018_v1 = vand.u32 4294901760, %v4746_v60  ;;  %v187_v24 = vand.u32 4294901760, %v60_v6 }
  0x45   :  { %v4793_v56 = vsub.f32 %v59_v18, %v184_v2  ;;  %v309_v29 = vand.u32 4294901760, %v308_v37  ;;  %v316_v33 = vand.u32 4294901760, %v315_v59  ;;  %v4795_v7 = vpack.c.bf16 %v238_v47, %v235_v13  ;;  %v62_v37 = vld [vmem:[#allocation5 + $0x70] sm:$0xff] }
  0x46   :  { %3957 = vmatprep.subr.bf16.mxu1 %v3956_v34  ;;  %v4797_v10 = vsub.f32 %v76_v3, %v235_v13  ;;  %v434_v8 = vsub.f32 %v4737_v50, %v6016_v52  ;;  %v441_v19 = vsub.f32 %v4746_v60, %v6018_v1  ;;  %v190_v57 = vand.u32 4294901760, %v61_v11  ;;  %v63_v1 = vld [vmem:[#allocation5 + $0x78] sm:$0xff] }
  0x47   :  { %6141 = vst [vmem:[#allocation12_spill] sm:$0xff] %v4795_v7  ;;  %v3958_v18 = vpack.c.bf16 %v316_v33, %v309_v29  ;;  %3937 = vmatprep.subr.bf16.mxu0 %v4795_v7  ;;  %v4806_v2 = vsub.f32 %v77_v0, %v238_v47  ;;  %v6021_v34 = vand.u32 4294901760, %v4752_v5  ;;  %v6023_v3 = vand.u32 4294901760, %v4763_v30 }
  0x48   :  { %v435_v59 = vand.u32 4294901760, %v434_v8  ;;  %v442_v13 = vand.u32 4294901760, %v441_v19  ;;  %v4810_v52 = vpack.c.bf16 %v190_v57, %v187_v24  ;;  %v4812_v53 = vsub.f32 %v60_v6, %v187_v24 }
  0x49   :  { %3959 = vmatpush3.bf16.msra.mxu1 %v3958_v18  ;;  %v322_v33 = vsub.f32 %v4752_v5, %v6021_v34  ;;  %v329_v0 = vsub.f32 %v4763_v30, %v6023_v3  ;;  %v241_v47 = vand.u32 4294901760, %v78_v9  ;;  %v244_v29 = vand.u32 4294901760, %v79_v54 }
  0x4a   :  { %6142 = vst [vmem:[#allocation13_spill] sm:$0xff] %v4810_v52  ;;  %v3960_v36 = vpack.c.bf16 %v442_v13, %v435_v59  ;;  %3939 = vmatpush3.bf16.msra.mxu0 %v4810_v52  ;;  %v6027_v8 = vand.u32 4294901760, %v4767_v51  ;;  %v6028_v6 = vand.u32 4294901760, %v4776_v55  ;;  %v193_v24 = vand.u32 4294901760, %v62_v37 }
  0x4b   :  { %v4823_v19 = vsub.f32 %v61_v11, %v190_v57  ;;  %v323_v18 = vand.u32 4294901760, %v322_v33  ;;  %v330_v35 = vand.u32 4294901760, %v329_v0  ;;  %v4825_v34 = vpack.c.bf16 %v244_v29, %v241_v47 }
  0x4c   :  { %3961 = vmatprep.subr.bf16.mxu1 %v3960_v36  ;;  %v4827_v44 = vsub.f32 %v78_v9, %v241_v47  ;;  %v448_v59 = vsub.f32 %v4767_v51, %v6027_v8  ;;  %v455_v13 = vsub.f32 %v4776_v55, %v6028_v6  ;;  %v196_v3 = vand.u32 4294901760, %v63_v1  ;;  %v41_v9 = vld [vmem:[#allocation2] sm:$0xff] }
  0x4d   :  { %6143 = vst [vmem:[#allocation14_spill] sm:$0xff] %v4825_v34  ;;  %v3962_v52 = vpack.c.bf16 %v330_v35, %v323_v18  ;;  %3941 = vmatprep.subr.bf16.mxu0 %v4825_v34  ;;  %v4836_v11 = vsub.f32 %v79_v54, %v244_v29  ;;  %v6029_v57 = vand.u32 4294901760, %v4782_v61  ;;  %v6030_v36 = vand.u32 4294901760, %v4793_v56 }
  0x4e   :  { %v449_v33 = vand.u32 4294901760, %v448_v59  ;;  %v456_v0 = vand.u32 4294901760, %v455_v13  ;;  %v4840_v47 = vpack.c.bf16 %v196_v3, %v193_v24  ;;  %v4842_v8 = vsub.f32 %v62_v37, %v193_v24 }
  0x4f   :  { %3963 = vmatpush3.bf16.msra.mxu1 %v3962_v52  ;;  %v336_v35 = vsub.f32 %v4782_v61, %v6029_v57  ;;  %v343_v54 = vsub.f32 %v4793_v56, %v6030_v36  ;;  %v4850_v29 = vand.u32 4294901760, %v42_v41  ;;  %v6033_v18 = vand.u32 4294901760, %v4797_v10 }
  0x50   :  { %6144 = vst [vmem:[#allocation15_spill] sm:$0xff] %v4840_v47  ;;  %v3964_v6 = vpack.c.bf16 %v456_v0, %v449_v33  ;;  %3943 = vmatpush3.bf16.msra.mxu0 %v4840_v47  ;;  %v6039_v59 = vand.u32 4294901760, %v4806_v2  ;;  %v3976_v52 = vpack.c.bf16 %v4667_v32, %v4665_v31  ;;  %v4857_v37 = vand.u32 4294901760, %v41_v9 }
  0x51   :  { %6145 = vst [vmem:[#allocation16_spill] sm:$0xff] %v4850_v29  ;;  %v337_v24 = vand.u32 4294901760, %v336_v35  ;;  %v344_v13 = vand.u32 4294901760, %v343_v54  ;;  %v4860_v57 = vsub.f32 %v42_v41, %v4850_v29  ;;  %v462_v36 = vsub.f32 %v4797_v10, %v6033_v18  ;;  %487 = vmatprep.mubr.f32.mxu1 %v4850_v29 }
  0x52   :  { %3965 = vmatprep.subr.bf16.mxu1 %v3964_v6  ;;  %v469_v33 = vsub.f32 %v4806_v2, %v6039_v59  ;;  %3977 = vmatprep.subr.bf16.mxu0 %v3976_v52  ;;  %v4870_v0 = vsub.f32 %v41_v9, %v4857_v37  ;;  %v6038_v35 = vand.u32 4294901760, %v4812_v53  ;;  %v6040_v41 = vand.u32 4294901760, %v4823_v19 }
  0x53   :  { %v4874_v54 = vsub.f32 %v63_v1, %v196_v3  ;;  %v3966_v47 = vpack.c.bf16 %v344_v13, %v337_v24  ;;  %v6041_v18 = vand.u32 4294901760, %v4860_v57  ;;  %v463_v34 = vand.u32 4294901760, %v462_v36 }
  0x54   :  { %v470_v29 = vand.u32 4294901760, %v469_v33  ;;  %v254_v6 = vand.u32 4294901760, %v4870_v0  ;;  %v350_v52 = vsub.f32 %v4812_v53, %v6038_v35  ;;  %v357_v9 = vsub.f32 %v4823_v19, %v6040_v41 }
  0x55   :  { %3967 = vmatpush3.bf16.msra.mxu1 %v3966_v47  ;;  %v249_v1 = vsub.f32 %v4860_v57, %v6041_v18  ;;  %v3978_v3 = vpack.c.bf16 %v4651_v21, %v4647_v15  ;;  %v6046_v36 = vand.u32 4294901760, %v4827_v44  ;;  %v6049_v24 = vand.u32 4294901760, %v4836_v11 }
  0x56   :  { %v3968_v13 = vpack.c.bf16 %v470_v29, %v463_v34  ;;  %v255_v33 = vsub.f32 %v4870_v0, %v254_v6  ;;  %v351_v35 = vand.u32 4294901760, %v350_v52  ;;  %v358_v59 = vand.u32 4294901760, %v357_v9 }
  0x57   :  { %v250_v41 = vand.u32 4294901760, %v249_v1  ;;  %v476_v47 = vsub.f32 %v4827_v44, %v6046_v36  ;;  %v483_v18 = vsub.f32 %v4836_v11, %v6049_v24  ;;  %v6048_v7 = vand.u32 4294901760, %v4842_v8 }
  0x58   :  { %3969 = vmatprep.subr.bf16.mxu1 %v3968_v13  ;;  %v256_v23 = vand.u32 4294901760, %v255_v33  ;;  %v3970_v34 = vpack.c.bf16 %v358_v59, %v351_v35  ;;  %v3980_v29 = vpack.c.bf16 %v4658_v26, %v4656_v25  ;;  %v6047_v52 = vand.u32 4294901760, %v4874_v54 }
  0x59   :  { %251 = vmatprep.mubr.f32.mxu0 %v250_v41  ;;  %v477_v9 = vand.u32 4294901760, %v476_v47  ;;  %v484_v1 = vand.u32 4294901760, %v483_v18  ;;  %v364_v36 = vsub.f32 %v4842_v8, %v6048_v7  ;;  %v3982_v33 = vpack.c.bf16 %v4672_v38, %v4662_v28 }
  0x5a   :  { %257 = vmatmul.mubr.f32.vlgmr.msra.gmra.mrb[0].mxu0 %v256_v23  ;;  %3971 = vmatpush3.bf16.msra.mxu1 %v3970_v34  ;;  %v371_v13 = vsub.f32 %v4874_v54, %v6047_v52  ;;  %v3984_v41 = vpack.c.bf16 %v4679_v43, %v4676_v40  ;;  %v3986_v23 = vpack.c.bf16 %v4702_v58, %v4684_v46  ;;  %v6147_v34 = vand.u32 4294901760, %v4667_v32 }
  0x5b   :  { %3979 = vmatpush3.bf16.msra.mxu0 %v3978_v3  ;;  %v3972_v59 = vpack.c.bf16 %v484_v1, %v477_v9  ;;  %v365_v35 = vand.u32 4294901760, %v364_v36  ;;  %624 = vmatprep.mubr.f32.mxu0 %v4860_v57  ;;  %v3988_v47 = vpack.c.bf16 %v4718_v12, %v4706_v63  ;;  %v6146_v36 = vand.u32 4294901760, %v4665_v31 }
  0x5c   :  { %3981 = vmatprep.subr.bf16.mxu0 %v3980_v29  ;;  %v372_v18 = vand.u32 4294901760, %v371_v13  ;;  %v6148_v1 = vand.u32 4294901760, %v4647_v15  ;;  %v6149_v29 = vand.u32 4294901760, %v4651_v21  ;;  %v6150_v52 = vand.u32 4294901760, %v4656_v25 }
  0x5d   :  { %3973 = vmatprep.subr.bf16.mxu1 %v3972_v59  ;;  %v4040_v9 = vpack.c.bf16 %v6147_v34, %v6146_v36  ;;  %v6151_v59 = vand.u32 4294901760, %v4658_v26  ;;  %v6152_v24 = vand.u32 4294901760, %v4662_v28  ;;  %v6154_v31 = vand.u32 4294901760, %v4676_v40 }
  0x5e   :  { %v3974_v3 = vpack.c.bf16 %v372_v18, %v365_v35  ;;  %v4042_v13 = vpack.c.bf16 %v6149_v29, %v6148_v1  ;;  %v6153_v35 = vand.u32 4294901760, %v4672_v38  ;;  %v6155_v32 = vand.u32 4294901760, %v4679_v43  ;;  %v6169_v29 = vld [vmem:[#allocation16_spill] sm:$0xff] }
  0x5f   :  { %v4044_v7 = vpack.c.bf16 %v6151_v59, %v6150_v52  ;;  %3983 = vmatpush3.bf16.msra.mxu0 %v3982_v33  ;;  %v6156_v15 = vand.u32 4294901760, %v4684_v46  ;;  %v6157_v21 = vand.u32 4294901760, %v4702_v58  ;;  %v6158_v25 = vand.u32 4294901760, %v4706_v63  ;;  %v97_v59 = vld [vmem:[#allocation5 + $0x188] sm:$0xff] }
  0x60   :  { %v4046_v18 = vpack.c.bf16 %v6153_v35, %v6152_v24  ;;  %v4048_v36 = vpack.c.bf16 %v6155_v32, %v6154_v31  ;;  %v6159_v26 = vand.u32 4294901760, %v4718_v12  ;;  %3975 = vmatpush3.bf16.msra.mxu1 %v3974_v3  ;;  %3985 = vmatprep.subr.bf16.mxu0 %v3984_v41  ;;  %v6160_v28 = vand.u32 4294901760, %v4722_v17  ;;  %v80_v35 = vld [vmem:[#allocation5 + $0x100] sm:$0xff]  ;;  %v81_v31 = vld [vmem:[#allocation5 + $0x108] sm:$0xff] }
  0x61   :  { %v4943_v34 = vpack.c.bf16 %v6157_v21, %v6156_v15  ;;  %v6161_v38 = vand.u32 4294901760, %v4733_v42  ;;  %v6162_v43 = vand.u32 4294901760, %v4737_v50  ;;  %v6163_v46 = vand.u32 4294901760, %v4746_v60  ;;  %4009 = vmatprep.subr.bf16.mxu1 %v4645_v14  ;;  %v6170_v32 = vld [vmem:[#allocation13_spill] sm:$0xff]  ;;  %v6171_v15 = vld [vmem:[#allocation14_spill] sm:$0xff] }
  0x62   :  { %v4949_v52 = vpack.c.bf16 %v6159_v26, %v6158_v25  ;;  %v6164_v63 = vand.u32 4294901760, %v4752_v5  ;;  %v6165_v12 = vand.u32 4294901760, %v4763_v30  ;;  %v3990_v33 = vpack.c.bf16 %v4733_v42, %v4722_v17 }
  0x63   :  { %v4955_v40 = vpack.c.bf16 %v6161_v38, %v6160_v28  ;;  %v4961_v58 = vpack.c.bf16 %v6163_v46, %v6162_v43  ;;  %489 = vmatmul.mubr.f32.vlgmr.msra.gmra.mrb[0].mxu1 %v4857_v37  ;;  %3987 = vmatpush3.bf16.msra.mxu0 %v3986_v23  ;;  %v3992_v41 = vpack.c.bf16 %v4746_v60, %v4737_v50  ;;  %v6166_v3 = vand.u32 4294901760, %v4860_v57  ;;  %v6167_v57 = vld [vmem:[#allocation11_spill] sm:$0xff]  ;;  %v6168_v23 = vld [vmem:[#allocation12_spill] sm:$0xff]  ;;  %v98_v38 = vld [vmem:[#allocation5 + $0x190] sm:$0xff] }
  0x64   :  { %v4967_v24 = vpack.c.bf16 %v6165_v12, %v6164_v63  ;;  %4011 = vmatpush3.bf16.msra.mxu1 %v4649_v20  ;;  %3989 = vmatprep.subr.bf16.mxu0 %v3988_v47  ;;  %v3994_v1 = vpack.c.bf16 %v4763_v30, %v4752_v5  ;;  %v3996_v17 = vpack.c.bf16 %v4776_v55, %v4767_v51  ;;  %v96_v47 = vld [vmem:[#allocation5 + $0x180] sm:$0xff]  ;;  %v1064_v25 = vand.u32 4294901760, %v97_v59  ;;  %v6172_v28 = vld [vmem:[#allocation15_spill] sm:$0xff]  ;;  %v82_v46 = vld [vmem:[#allocation5 + $0x110] sm:$0xff] }
  0x65   :  { %4013 = vmatprep.subr.bf16.mxu1 %v4653_v22  ;;  %731 = vmatprep.mubr.f32.mxu1 %v6166_v3  ;;  %v3998_v42 = vpack.c.bf16 %v4793_v56, %v4782_v61  ;;  %v4000_v50 = vpack.c.bf16 %v4806_v2, %v4797_v10  ;;  %v4002_v60 = vpack.c.bf16 %v4823_v19, %v4812_v53  ;;  %v1061_v21 = vand.u32 4294901760, %v96_v47  ;;  %v83_v63 = vld [vmem:[#allocation5 + $0x118] sm:$0xff] }
  0x66   :  { %v4004_v5 = vpack.c.bf16 %v4836_v11, %v4827_v44  ;;  %v4006_v30 = vpack.c.bf16 %v4874_v54, %v4842_v8  ;;  %v1013_v26 = vand.u32 4294901760, %v80_v35  ;;  %v5011_v12 = vsub.f32 %v97_v59, %v1064_v25 }
  0x67   :  { %3991 = vmatpush3.bf16.msra.mxu0 %v3990_v33  ;;  %v5009_v43 = vsub.f32 %v96_v47, %v1061_v21  ;;  %vm3203_vm2 = vcmask 80896  }
  0x68   :  { %4015 = vmatpush3.bf16.msra.mxu1 %v4660_v27  ;;  %3993 = vmatprep.subr.bf16.mxu0 %v3992_v41  ;;  %v1067_v41 = vand.u32 4294901760, %v98_v38  ;;  %v6059_v59 = vand.u32 4294901760, %v5011_v12 }
  0x69   :  { %4017 = vmatprep.subr.bf16.mxu1 %v4674_v39 }
  0x6b   :  { %3995 = vmatpush3.bf16.msra.mxu0 %v3994_v1  ;;  %v6175_v1 = vand.u32 4294901760, %v4782_v61 }
  0x6c   :  { %4019 = vmatpush3.bf16.msra.mxu1 %v4682_v45  ;;  %3997 = vmatprep.subr.bf16.mxu0 %v3996_v17  ;;  %v6176_v17 = vand.u32 4294901760, %v4793_v56  ;;  %v6181_v56 = vand.u32 4294901760, %v4827_v44  ;;  %v84_v44 = vld [vmem:[#allocation5 + $0x120] sm:$0xff] }
  0x6d   :  { %4021 = vmatprep.subr.bf16.mxu1 %v4704_v62 }
  0x6f   :  { %3999 = vmatpush3.bf16.msra.mxu0 %v3998_v42  ;;  %v4062_v42 = vpack.c.bf16 %v6176_v17, %v6175_v1  ;;  %v102_v17 = vld [vmem:[#allocation5 + $0x1b0] sm:$0xff] }
  0x70   :  { %4023 = vmatpush3.bf16.msra.mxu1 %v4720_v16  ;;  %4001 = vmatprep.subr.bf16.mxu0 %v4000_v50  ;;  %v100_v50 = vld [vmem:[#allocation5 + $0x1a0] sm:$0xff] }
  0x71   :  { %4025 = vmatprep.subr.bf16.mxu1 %v4735_v49 }
  0x73   :  { %4003 = vmatpush3.bf16.msra.mxu0 %v4002_v60  ;;  %v101_v60 = vld [vmem:[#allocation5 + $0x1a8] sm:$0xff] }
  0x74   :  { %4027 = vmatpush3.bf16.msra.mxu1 %v4750_v4  ;;  %4005 = vmatprep.subr.bf16.mxu0 %v4004_v5 }
  0x75   :  { %4029 = vmatprep.subr.bf16.mxu1 %v4765_v48 }
  0x77   :  { %4007 = vmatpush3.bf16.msra.mxu0 %v4006_v30  ;;  %v6184_v30 = vand.u32 4294901760, %v4874_v54 }
  0x78   :  { %4031 = vmatpush3.bf16.msra.mxu1 %v6167_v57  ;;  %4041 = vmatprep.subr.bf16.mxu0 %v4040_v9  ;;  %v1016_v9 = vand.u32 4294901760, %v81_v31 }
  0x79   :  { %4033 = vmatprep.subr.bf16.mxu1 %v6168_v23 }
  0x7a   :  { %627 = vmatmul.mubr.f32.vlgmr.msra.gmra.mrb[2].mxu0 %v4870_v0  ;;  %v5015_v33 = vsub.f32 %v81_v31, %v1016_v9  ;;  %v6177_v0 = vand.u32 4294901760, %v4797_v10  ;;  %v6182_v10 = vand.u32 4294901760, %v4836_v11 }
  0x7b   :  { %4043 = vmatpush3.bf16.msra.mxu0 %v4042_v13  ;;  %901 = vmatprep.mubr.f32.mxu0 %v6169_v29  ;;  %v99_v13 = vld [vmem:[#allocation5 + $0x198] sm:$0xff] }
  0x7c   :  { %4035 = vmatpush3.bf16.msra.mxu1 %v6170_v32  ;;  %4045 = vmatprep.subr.bf16.mxu0 %v4044_v7  ;;  %v5013_v7 = vsub.f32 %v80_v35, %v1013_v26  ;;  %v1070_v3 = vand.u32 4294901760, %v99_v13  ;;  %v5047_v5 = vpack.c.bf16 %v6182_v10, %v6181_v56  ;;  %v85_v35 = vld [vmem:[#allocation5 + $0x128] sm:$0xff]  ;;  %v6050_v31 = vand.u32 4294901760, %v5015_v33 }
  0x7d   :  { %4037 = vmatprep.subr.bf16.mxu1 %v6171_v15 }
  0x7e   :  { %v6056_v11 = vand.u32 4294901760, %v5013_v7  ;;  %v5065_v54 = vpack.c.bf16 %v1070_v3, %v1067_v41 }
  0x7f   :  { %4047 = vmatpush3.bf16.msra.mxu0 %v4046_v18  ;;  %v6173_v18 = vand.u32 4294901760, %v4767_v51  ;;  %v1019_v51 = vand.u32 4294901760, %v82_v46 }
  0x80   :  { %4039 = vmatpush3.bf16.msra.mxu1 %v6172_v28  ;;  %4049 = vmatprep.subr.bf16.mxu0 %v4048_v36  ;;  %v6174_v36 = vand.u32 4294901760, %v4776_v55  ;;  %v1022_v55 = vand.u32 4294901760, %v83_v63  ;;  %6186 = vst [vmem:[#allocation12_spill] sm:$0xff] %v5065_v54 }
  0x81   :  { %4073 = vmatprep.subr.bf16.mxu1 %v4645_v14 }
  0x82   :  { %v4060_v14 = vpack.c.bf16 %v6174_v36, %v6173_v18  ;;  %v1076_v18 = vand.u32 4294901760, %v101_v60  ;;  %v5073_v36 = vpack.c.bf16 %v1022_v55, %v1019_v51 }
  0x83   :  { %735 = vmatmul.mubr.f32.vlgmr.msra.gmra.mrb[2].mxu1 %v254_v6  ;;  %4051 = vmatpush3.bf16.msra.mxu0 %v4943_v34  ;;  %v6178_v6 = vand.u32 4294901760, %v4806_v2  ;;  %v6183_v2 = vand.u32 4294901760, %v4842_v8  ;;  %v5063_v8 = vpack.c.bf16 %v1016_v9, %v1013_v26  ;;  %v1025_v9 = vand.u32 4294901760, %v84_v44 }
  0x84   :  { %4075 = vmatpush3.bf16.msra.mxu1 %v4649_v20  ;;  %4053 = vmatprep.subr.bf16.mxu0 %v4949_v52  ;;  %v6179_v20 = vand.u32 4294901760, %v4812_v53  ;;  %v6180_v52 = vand.u32 4294901760, %v4823_v19  ;;  %v44_v53 = vld [vmem:[#allocation2 + $0x18] sm:$0xff]  ;;  %v5057_v19 = vpack.c.bf16 %v1064_v25, %v1061_v21  ;;  %v5069_v21 = vsub.f32 %v98_v38, %v1067_v41  ;;  %6187 = vst [vmem:[#allocation16_spill] sm:$0xff] %v5073_v36 }
  0x85   :  { %v5034_v34 = vpack.c.bf16 %v6178_v6, %v6177_v0  ;;  %4077 = vmatprep.subr.bf16.mxu1 %v4653_v22  ;;  %v5053_v47 = vpack.c.bf16 %v6184_v30, %v6183_v2  ;;  %1005 = vmatprep.mubr.f32.mxu1 %v6169_v29  ;;  %v6060_v22 = vand.u32 4294901760, %v5009_v43  ;;  %6185 = vst [vmem:[#allocation11_spill] sm:$0xff] %v5063_v8  ;;  %v1073_v29 = vand.u32 4294901760, %v100_v50 }
  0x86   :  { %v5041_v61 = vpack.c.bf16 %v6180_v52, %v6179_v20  ;;  %v5071_v25 = vsub.f32 %v99_v13, %v1070_v3  ;;  %v5075_v1 = vand.u32 4294901760, %v44_v53  ;;  %v5083_v38 = vsub.f32 %v83_v63, %v1022_v55  ;;  %v86_v52 = vld [vmem:[#allocation5 + $0x130] sm:$0xff] }
  0x87   :  { %4055 = vmatpush3.bf16.msra.mxu0 %v4955_v40  ;;  %v5078_v40 = vsub.f32 %v82_v46, %v1019_v51  ;;  %v1240_v26 = vsub.f32 %v5009_v43, %v6060_v22  ;;  %v1247_v13 = vsub.f32 %v5011_v12, %v6059_v59  ;;  %v1135_v46 = vsub.f32 %v5015_v33, %v6050_v31  ;;  %v104_v31 = vld [vmem:[#allocation5 + $0x1c0] sm:$0xff]  ;;  %v91_v22 = vld [vmem:[#allocation5 + $0x158] sm:$0xff] }
  0x88   :  { %4079 = vmatpush3.bf16.msra.mxu1 %v4660_v27  ;;  %4057 = vmatprep.subr.bf16.mxu0 %v4961_v58  ;;  %6188 = vst [vmem:[#allocation13_spill] sm:$0xff] %v5075_v1  ;;  %v1028_v27 = vand.u32 4294901760, %v85_v35  ;;  %v103_v58 = vld [vmem:[#allocation5 + $0x1b8] sm:$0xff]  ;;  %v5095_v41 = vpack.c.bf16 %v1076_v18, %v1073_v29  ;;  %v5097_v3 = vsub.f32 %v100_v50, %v1073_v29  ;;  %v1079_v6 = vand.u32 4294901760, %v102_v17 }
  0x89   :  { %4081 = vmatprep.subr.bf16.mxu1 %v4674_v39  ;;  %v1128_v39 = vsub.f32 %v5013_v7, %v6056_v11  ;;  %v5099_v63 = vsub.f32 %v101_v60, %v1076_v18  ;;  %v5102_v0 = vsub.f32 %v44_v53, %v5075_v1  ;;  %v1082_v51 = vand.u32 4294901760, %v103_v58 }
  0x8a   :  { %6189 = vst [vmem:[#allocation14_spill] sm:$0xff] %v5095_v41  ;;  %v6054_v55 = vand.u32 4294901760, %v5069_v21  ;;  %v6051_v20 = vand.u32 4294901760, %v5071_v25  ;;  %v1241_v50 = vand.u32 4294901760, %v1240_v26  ;;  %v5108_v56 = vpack.c.bf16 %v1028_v27, %v1025_v9 }
  0x8b   :  { %4059 = vmatpush3.bf16.msra.mxu0 %v4967_v24  ;;  %v87_v24 = vld [vmem:[#allocation5 + $0x138] sm:$0xff]  ;;  %v5110_v60 = vsub.f32 %v84_v44, %v1025_v9  ;;  %v5112_v10 = vsub.f32 %v85_v35, %v1028_v27  ;;  %v1248_v2 = vand.u32 4294901760, %v1247_v13  ;;  %v6053_v30 = vand.u32 4294901760, %v5078_v40  ;;  %v105_v27 = vld [vmem:[#allocation5 + $0x1c8] sm:$0xff] }
  0x8c   :  { %4083 = vmatpush3.bf16.msra.mxu1 %v4682_v45  ;;  %4061 = vmatprep.subr.bf16.mxu0 %v4060_v14  ;;  %6190 = vst [vmem:[#allocation15_spill] sm:$0xff] %v5108_v56  ;;  %v1129_v45 = vand.u32 4294901760, %v1128_v39  ;;  %v1136_v14 = vand.u32 4294901760, %v1135_v46  ;;  %v1031_v53 = vand.u32 4294901760, %v86_v52  ;;  %v1034_v29 = vand.u32 4294901760, %v87_v24 }
  0x8d   :  { %4085 = vmatprep.subr.bf16.mxu1 %v4704_v62  ;;  %v6052_v18 = vand.u32 4294901760, %v5083_v38  ;;  %v6063_v62 = vand.u32 4294901760, %v5102_v0  ;;  %v5119_v44 = vpack.c.bf16 %v1082_v51, %v1079_v6  ;;  %v1254_v35 = vsub.f32 %v5069_v21, %v6054_v55 }
  0x8e   :  { %v5128_v26 = vsub.f32 %v102_v17, %v1079_v6  ;;  %v5130_v9 = vsub.f32 %v103_v58, %v1082_v51  ;;  %v5134_v13 = vpack.c.bf16 %v1248_v2, %v1241_v50  ;;  %v5136_v39 = vpack.c.bf16 %v1136_v14, %v1129_v45 }
  0x8f   :  { %4063 = vmatpush3.bf16.msra.mxu0 %v4062_v42  ;;  %6191 = vst [vmem:[#allocation17_spill] sm:$0xff] %v5119_v44  ;;  %v1261_v42 = vsub.f32 %v5071_v25, %v6051_v20  ;;  %v1142_v46 = vsub.f32 %v5078_v40, %v6053_v30  ;;  %v1085_v20 = vand.u32 4294901760, %v104_v31  ;;  %v1149_v17 = vsub.f32 %v5083_v38, %v6052_v18 }
  0x90   :  { %4087 = vmatpush3.bf16.msra.mxu1 %v4720_v16  ;;  %4065 = vmatprep.subr.bf16.mxu0 %v5034_v34  ;;  %v6055_v16 = vand.u32 4294901760, %v5097_v3  ;;  %v6058_v34 = vand.u32 4294901760, %v5099_v63  ;;  %v6057_v58 = vand.u32 4294901760, %v5110_v60  ;;  %v1111_v6 = vsub.f32 %v5102_v0, %v6063_v62 }
  0x91   :  { %4089 = vmatprep.subr.bf16.mxu1 %v4735_v49  ;;  %v5142_v49 = vpack.c.bf16 %v1034_v29, %v1031_v53  ;;  %v1255_v51 = vand.u32 4294901760, %v1254_v35  ;;  %v1262_v50 = vand.u32 4294901760, %v1261_v42  ;;  %v1088_v2 = vand.u32 4294901760, %v105_v27  ;;  %v89_v42 = vld [vmem:[#allocation5 + $0x148] sm:$0xff] }
  0x92   :  { %v6062_v45 = vand.u32 4294901760, %v5112_v10  ;;  %v5155_v14 = vsub.f32 %v86_v52, %v1031_v53  ;;  %v5157_v18 = vsub.f32 %v87_v24, %v1034_v29  ;;  %v1268_v30 = vsub.f32 %v5097_v3, %v6055_v16  ;;  %v106_v29 = vld [vmem:[#allocation5 + $0x1d0] sm:$0xff]  ;;  %v107_v16 = vld [vmem:[#allocation5 + $0x1d8] sm:$0xff] }
  0x93   :  { %4067 = vmatpush3.bf16.msra.mxu0 %v5041_v61  ;;  %6192 = vst [vmem:[#allocation18_spill] sm:$0xff] %v5142_v49  ;;  %v88_v61 = vld [vmem:[#allocation5 + $0x140] sm:$0xff]  ;;  %v5165_v35 = vsub.f32 %v104_v31, %v1085_v20  ;;  %v6061_v55 = vand.u32 4294901760, %v5128_v26  ;;  %v1150_v52 = vand.u32 4294901760, %v1149_v17  ;;  %v1156_v53 = vsub.f32 %v5110_v60, %v6057_v58 }
  0x94   :  { %4091 = vmatpush3.bf16.msra.mxu1 %v4750_v4  ;;  %4069 = vmatprep.subr.bf16.mxu0 %v5047_v5  ;;  %v1275_v4 = vsub.f32 %v5099_v63, %v6058_v34  ;;  %v1143_v5 = vand.u32 4294901760, %v1142_v46  ;;  %v1037_v24 = vand.u32 4294901760, %v88_v61  ;;  %v1112_v11 = vand.u32 4294901760, %v1111_v6  ;;  %v90_v6 = vld [vmem:[#allocation5 + $0x150] sm:$0xff] }
  0x95   :  { %4093 = vmatprep.subr.bf16.mxu1 %v4765_v48  ;;  %v6064_v48 = vand.u32 4294901760, %v5130_v9  ;;  %v5175_v31 = vpack.c.bf16 %v1262_v50, %v1255_v51  ;;  %v5177_v46 = vpack.c.bf16 %v1088_v2, %v1085_v20  ;;  %v5183_v17 = vsub.f32 %v105_v27, %v1088_v2 }
  0x96   :  { %v1269_v58 = vand.u32 4294901760, %v1268_v30  ;;  %v1276_v34 = vand.u32 4294901760, %v1275_v4  ;;  %v1040_v59 = vand.u32 4294901760, %v89_v42  ;;  %v1094_v51 = vand.u32 4294901760, %v107_v16 }
  0x97   :  { %4071 = vmatpush3.bf16.msra.mxu0 %v5053_v47  ;;  %6193 = vst [vmem:[#allocation19_spill] sm:$0xff] %v5177_v46  ;;  %v1163_v47 = vsub.f32 %v5112_v10, %v6062_v45  ;;  %v1282_v20 = vsub.f32 %v5128_v26, %v6061_v55  ;;  %v1289_v50 = vsub.f32 %v5130_v9, %v6064_v48  ;;  %v1157_v27 = vand.u32 4294901760, %v1156_v53  ;;  %v108_v48 = vld [vmem:[#allocation5 + $0x1e0] sm:$0xff]  ;;  %v109_v53 = vld [vmem:[#allocation5 + $0x1e8] sm:$0xff] }
  0x98   :  { %4095 = vmatpush3.bf16.msra.mxu1 %v6167_v57  ;;  %4105 = vmatprep.subr.bf16.mxu0 %v5057_v19  ;;  %v1091_v57 = vand.u32 4294901760, %v106_v29  ;;  %v5195_v30 = vsub.f32 %v88_v61, %v1037_v24  ;;  %v1043_v55 = vand.u32 4294901760, %v90_v6  ;;  %v1046_v45 = vand.u32 4294901760, %v91_v22 }
  0x99   :  { %4097 = vmatprep.subr.bf16.mxu1 %v6168_v23  ;;  %v5193_v23 = vpack.c.bf16 %v1150_v52, %v1143_v5  ;;  %v1164_v4 = vand.u32 4294901760, %v1163_v47  ;;  %v6069_v62 = vand.u32 4294901760, %v5157_v18  ;;  %v5202_v5 = vpack.c.bf16 %v1276_v34, %v1269_v58 }
  0x9a   :  { %903 = vmatmul.mubr.f32.vlgmr.msra.gmra.mrb[4].mxu0 %v4857_v37  ;;  %v5204_v61 = vpack.c.bf16 %v1040_v59, %v1037_v24  ;;  %v5206_v52 = vsub.f32 %v89_v42, %v1040_v59  ;;  %v1283_v2 = vand.u32 4294901760, %v1282_v20  ;;  %v1290_v47 = vand.u32 4294901760, %v1289_v50  ;;  %v5239_v50 = vld [vmem:[#allocation5 + $0x168] sm:$0xff] }
  0x9b   :  { %4107 = vmatpush3.bf16.msra.mxu0 %v5063_v8  ;;  %1113 = vmatprep.mubr.f32.mxu0 %v1112_v11  ;;  %v6071_v11 = vand.u32 4294901760, %v5165_v35  ;;  %v5212_v8 = vld [vmem:[#allocation5 + $0x160] sm:$0xff]  ;;  %v5217_v34 = vsub.f32 %v107_v16, %v1094_v51  ;;  %v6197_v59 = vand.u32 4294901760, %v5155_v14  ;;  %v1097_v42 = vand.u32 4294901760, %v108_v48 }
  0x9c   :  { %4099 = vmatpush3.bf16.msra.mxu1 %v6170_v32  ;;  %4109 = vmatprep.subr.bf16.mxu0 %v5065_v54  ;;  %v5209_v32 = vpack.c.bf16 %v1094_v51, %v1091_v57  ;;  %v6070_v54 = vand.u32 4294901760, %v5183_v17  ;;  %v5224_v24 = vpack.c.bf16 %v1164_v4, %v1157_v27  ;;  %v5226_v20 = vpack.c.bf16 %v1046_v45, %v1043_v55 }
  0x9d   :  { %4101 = vmatprep.subr.bf16.mxu1 %v6171_v15  ;;  %v5215_v15 = vsub.f32 %v106_v29, %v1091_v57  ;;  %6196 = vst [vmem:[#allocation22_spill] sm:$0xff] %v5217_v34  ;;  %v1170_v58 = vsub.f32 %v5155_v14, %v6197_v59  ;;  %v1177_v29 = vsub.f32 %v5157_v18, %v6069_v62  ;;  %v1100_v57 = vand.u32 4294901760, %v109_v53 }
  0x9e   :  { %6194 = vst [vmem:[#allocation20_spill] sm:$0xff] %v5209_v32  ;;  %v5232_v16 = vsub.f32 %v90_v6, %v1043_v55  ;;  %v5234_v51 = vsub.f32 %v91_v22, %v1046_v45  ;;  %v6072_v27 = vand.u32 4294901760, %v5212_v8  ;;  %v4148_v4 = vpack.c.bf16 %v1290_v47, %v1283_v2  ;;  %v5249_v22 = vld [vmem:[#allocation5 + $0x1f8] sm:$0xff]  ;;  %v5272_v2 = vld [vmem:[#allocation5 + $0x170] sm:$0xff] }
  0x9f   :  { %4111 = vmatpush3.bf16.msra.mxu0 %v5073_v36  ;;  %6195 = vst [vmem:[#allocation21_spill] sm:$0xff] %v5215_v15  ;;  %v1303_v59 = vsub.f32 %v5183_v17, %v6070_v54  ;;  %v1171_v45 = vand.u32 4294901760, %v1170_v58  ;;  %v5253_v6 = vsub.f32 %v108_v48, %v1097_v42  ;;  %v43_v54 = vld [vmem:[#allocation2 + $0x10] sm:$0xff]  ;;  %v5259_v55 = vpack.c.bf16 %v1100_v57, %v1097_v42 }
  0xa0   :  { %4103 = vmatpush3.bf16.msra.mxu1 %v6172_v28  ;;  %4113 = vmatprep.subr.bf16.mxu0 %v5095_v41  ;;  %v1296_v28 = vsub.f32 %v5165_v35, %v6071_v11  ;;  %v1178_v11 = vand.u32 4294901760, %v1177_v29  ;;  %v5261_v62 = vsub.f32 %v109_v53, %v1100_v57  ;;  %v5268_v58 = vsub.f32 %v5212_v8, %v6072_v27  ;;  %v5274_v42 = vld [vmem:[#allocation5 + $0x178] sm:$0xff] }
  0xa1   :  { %4137 = vmatprep.subr.bf16.mxu1 %v5134_v13  ;;  %v5247_v13 = vld [vmem:[#allocation5 + $0x1f0] sm:$0xff]  ;;  %v1304_v53 = vand.u32 4294901760, %v1303_v59  ;;  %v6198_v29 = vand.u32 4294901760, %v5195_v30  ;;  %v6199_v57 = vand.u32 4294901760, %v5206_v52  ;;  %v5283_v27 = vand.u32 4294901760, %v43_v54 }
  0xa2   :  { %v1297_v48 = vand.u32 4294901760, %v1296_v28  ;;  %v1103_v47 = vand.u32 4294901760, %v5247_v13  ;;  %v6201_v41 = vand.u32 4294901760, %v5217_v34 }
  0xa3   :  { %1007 = vmatmul.mubr.f32.vlgmr.msra.gmra.mrb[4].mxu1 %v4857_v37  ;;  %4115 = vmatpush3.bf16.msra.mxu0 %v5108_v56  ;;  %v1052_v37 = vand.u32 4294901760, %v5239_v50  ;;  %v1191_v28 = vsub.f32 %v5206_v52, %v6199_v57  ;;  %v4150_v57 = vpack.c.bf16 %v1178_v11, %v1171_v45 }
  0xa4   :  { %4139 = vmatpush3.bf16.msra.mxu1 %v5136_v39  ;;  %4117 = vmatprep.subr.bf16.mxu0 %v5119_v44  ;;  %v1106_v39 = vand.u32 4294901760, %v5249_v22  ;;  %v6200_v44 = vand.u32 4294901760, %v5215_v15  ;;  %v1317_v59 = vsub.f32 %v5217_v34, %v6201_v41  ;;  %v5303_v41 = vsub.f32 %v5247_v13, %v1103_v47 }
  0xa5   :  { %4141 = vmatprep.subr.bf16.mxu1 %v5175_v31  ;;  %1349 = vmatprep.mubr.f32.mxu1 %v5075_v1  ;;  %v1184_v31 = vsub.f32 %v5195_v30, %v6198_v29  ;;  %v5297_v36 = vsub.f32 %v5239_v50, %v1052_v37  ;;  %v6093_v29 = vand.u32 4294901760, %v5261_v62  ;;  %v4152_v11 = vpack.c.bf16 %v1304_v53, %v1297_v48 }
  0xa6   :  { %v1310_v56 = vsub.f32 %v5215_v15, %v6200_v44  ;;  %v1058_v44 = vand.u32 4294901760, %v5274_v42  ;;  %v5306_v1 = vsub.f32 %v5249_v22, %v1106_v39  ;;  %v1192_v50 = vand.u32 4294901760, %v1191_v28 }
  0xa7   :  { %4119 = vmatpush3.bf16.msra.mxu0 %v5142_v49  ;;  %v1055_v49 = vand.u32 4294901760, %v5272_v2  ;;  %v1185_v45 = vand.u32 4294901760, %v1184_v31  ;;  %v6202_v13 = vand.u32 4294901760, %v5232_v16  ;;  %v6203_v22 = vand.u32 4294901760, %v5234_v51 }
  0xa8   :  { %4143 = vmatpush3.bf16.msra.mxu1 %v5193_v23  ;;  %4121 = vmatprep.subr.bf16.mxu0 %v5177_v46  ;;  %v5311_v46 = vsub.f32 %v43_v54, %v5283_v27  ;;  %v1311_v34 = vand.u32 4294901760, %v1310_v56  ;;  %v5326_v54 = vsub.f32 %v5274_v42, %v1058_v44  ;;  %v6204_v31 = vand.u32 4294901760, %v5253_v6 }
  0xa9   :  { %4145 = vmatprep.subr.bf16.mxu1 %v5202_v5  ;;  %v1318_v5 = vand.u32 4294901760, %v1317_v59  ;;  %v1198_v15 = vsub.f32 %v5232_v16, %v6202_v13  ;;  %v1205_v23 = vsub.f32 %v5234_v51, %v6203_v22  ;;  %v5323_v48 = vsub.f32 %v5272_v2, %v1055_v49 }
  0xaa   :  { %v1324_v28 = vsub.f32 %v5253_v6, %v6204_v31  ;;  %v1337_v59 = vand.u32 4294901760, %v5303_v41  ;;  %v6205_v42 = vand.u32 4294901760, %v5212_v8  ;;  %v5342_v22 = vpack.c.bf16 %v1106_v39, %v1103_v47 }
  0xab   :  { %4123 = vmatpush3.bf16.msra.mxu0 %v5204_v61  ;;  %v4154_v53 = vpack.c.bf16 %v1192_v50, %v1185_v45  ;;  %v4156_v31 = vpack.c.bf16 %v1318_v5, %v1311_v34  ;;  %v1199_v56 = vand.u32 4294901760, %v1198_v15  ;;  %v6207_v8 = vand.u32 4294901760, %v5297_v36 }
  0xac   :  { %4147 = vmatpush3.bf16.msra.mxu1 %v5224_v24  ;;  %4125 = vmatprep.subr.bf16.mxu0 %v5209_v32  ;;  %v1331_v24 = vsub.f32 %v5261_v62, %v6093_v29  ;;  %v5340_v13 = vpack.c.bf16 %v1052_v37, %v6205_v42  ;;  %v1206_v32 = vand.u32 4294901760, %v1205_v23  ;;  %v6206_v29 = vand.u32 4294901760, %v5268_v58 }
  0xad   :  { %4149 = vmatprep.subr.bf16.mxu1 %v4148_v4  ;;  %v1116_v4 = vand.u32 4294901760, %v5311_v46  ;;  %v1219_v47 = vsub.f32 %v5297_v36, %v6207_v8  ;;  %v6094_v37 = vand.u32 4294901760, %v5323_v48  ;;  %v6095_v39 = vand.u32 4294901760, %v5326_v54 }
  0xae   :  { %v1212_v2 = vsub.f32 %v5268_v58, %v6206_v29  ;;  %v1325_v45 = vand.u32 4294901760, %v1324_v28  ;;  %v1332_v34 = vand.u32 4294901760, %v1331_v24  ;;  %v1338_v15 = vsub.f32 %v5303_v41, %v1337_v59 }
  0xaf   :  { %4127 = vmatpush3.bf16.msra.mxu0 %v5226_v20  ;;  %v1117_v29 = vsub.f32 %v5311_v46, %v1116_v4  ;;  %v5365_v50 = vpack.c.bf16 %v1058_v44, %v1055_v49  ;;  %v4158_v5 = vpack.c.bf16 %v1206_v32, %v1199_v56  ;;  %v1220_v24 = vand.u32 4294901760, %v1219_v47 }
  0xb0   :  { %4151 = vmatpush3.bf16.msra.mxu1 %v4150_v57  ;;  %4129 = vmatprep.subr.bf16.mxu0 %v5259_v55  ;;  %v6208_v57 = vand.u32 4294901760, %v5306_v1  ;;  %v1213_v28 = vand.u32 4294901760, %v1212_v2  ;;  %v1226_v42 = vsub.f32 %v5323_v48, %v6094_v37  ;;  %v1233_v8 = vsub.f32 %v5326_v54, %v6095_v39 }
  0xb1   :  { %4153 = vmatprep.subr.bf16.mxu1 %v4152_v11  ;;  %v4168_v11 = vpack.c.bf16 %v5011_v12, %v5009_v43  ;;  %v4160_v49 = vpack.c.bf16 %v1332_v34, %v1325_v45  ;;  %v1339_v44 = vand.u32 4294901760, %v1338_v15  ;;  %v1118_v56 = vand.u32 4294901760, %v1117_v29  ;;  %v6209_v29 = vld [vmem:[#allocation11_spill] sm:$0xff] }
  0xb2   :  { %v1345_v23 = vsub.f32 %v5306_v1, %v6208_v57  ;;  %v4162_v2 = vpack.c.bf16 %v1220_v24, %v1213_v28  ;;  %v4172_v47 = vpack.c.bf16 %v5071_v25, %v5069_v21  ;;  %v1227_v57 = vand.u32 4294901760, %v1226_v42  ;;  %v6212_v24 = vld [vmem:[#allocation16_spill] sm:$0xff]  ;;  %v6213_v42 = vld [vmem:[#allocation21_spill] sm:$0xff] }
  0xb3   :  { %4131 = vmatpush3.bf16.msra.mxu0 %v5340_v13  ;;  %v1234_v37 = vand.u32 4294901760, %v1233_v8  ;;  %v4176_v34 = vpack.c.bf16 %v5099_v63, %v5097_v3  ;;  %v4178_v15 = vpack.c.bf16 %v5112_v10, %v5110_v60  ;;  %v4186_v28 = vpack.c.bf16 %v5206_v52, %v5195_v30  ;;  %v6214_v8 = vld [vmem:[#allocation22_spill] sm:$0xff] }
  0xb4   :  { %4155 = vmatpush3.bf16.msra.mxu1 %v4154_v53  ;;  %4133 = vmatprep.subr.bf16.mxu0 %v5342_v22  ;;  %v1346_v32 = vand.u32 4294901760, %v1345_v23  ;;  %v4170_v53 = vpack.c.bf16 %v5015_v33, %v5013_v7  ;;  %v4180_v23 = vpack.c.bf16 %v5130_v9, %v5128_v26 }
  0xb5   :  { %4157 = vmatprep.subr.bf16.mxu1 %v4156_v31  ;;  %v4174_v31 = vpack.c.bf16 %v5083_v38, %v5078_v40  ;;  %v4166_v45 = vpack.c.bf16 %v1234_v37, %v1227_v57  ;;  %v4182_v37 = vpack.c.bf16 %v5157_v18, %v5155_v14  ;;  %v4196_v57 = vpack.c.bf16 %v5306_v1, %v5303_v41 }
  0xb6   :  { %v4164_v39 = vpack.c.bf16 %v1346_v32, %v1339_v44  ;;  %v6215_v44 = vld [vmem:[#allocation14_spill] sm:$0xff]  ;;  %v4190_v32 = vpack.c.bf16 %v5234_v51, %v5232_v16 }
  0xb7   :  { %4135 = vmatpush3.bf16.msra.mxu0 %v5365_v50 }
  0xb8   :  { %4159 = vmatpush3.bf16.msra.mxu1 %v4158_v5  ;;  %4169 = vmatprep.subr.bf16.mxu0 %v4168_v11  ;;  %v6210_v5 = vld [vmem:[#allocation12_spill] sm:$0xff]  ;;  %v6211_v11 = vand.u32 4294901760, %v5102_v0 }
  0xb9   :  { %4161 = vmatprep.subr.bf16.mxu1 %v4160_v49  ;;  %v4188_v49 = vpack.c.bf16 %v6214_v8, %v6213_v42 }
  0xba   :  { %1119 = vmatmul.mubr.f32.vlgmr.msra.gmra.mrb[6].mxu0 %v1118_v56  ;;  %v6216_v56 = vld [vmem:[#allocation15_spill] sm:$0xff] }
  0xbb   :  { %4171 = vmatpush3.bf16.msra.mxu0 %v4170_v53  ;;  %1486 = vmatprep.mubr.f32.mxu0 %v5102_v0  ;;  %v4192_v0 = vpack.c.bf16 %v5261_v62, %v5253_v6  ;;  %v6217_v53 = vld [vmem:[#allocation17_spill] sm:$0xff] }
  0xbc   :  { %4163 = vmatpush3.bf16.msra.mxu1 %v4162_v2  ;;  %4173 = vmatprep.subr.bf16.mxu0 %v4172_v47  ;;  %v4194_v2 = vpack.c.bf16 %v5297_v36, %v5268_v58  ;;  %v6218_v47 = vld [vmem:[#allocation18_spill] sm:$0xff] }
  0xbd   :  { %4165 = vmatprep.subr.bf16.mxu1 %v4164_v39  ;;  %v4184_v39 = vpack.c.bf16 %v5183_v17, %v5165_v35 }
  0xbf   :  { %4175 = vmatpush3.bf16.msra.mxu0 %v4174_v31  ;;  %v6219_v31 = vld [vmem:[#allocation19_spill] sm:$0xff] }
  0xc0   :  { %4167 = vmatpush3.bf16.msra.mxu1 %v4166_v45  ;;  %4177 = vmatprep.subr.bf16.mxu0 %v4176_v34  ;;  %v4198_v45 = vpack.c.bf16 %v5326_v54, %v5323_v48  ;;  %v6220_v34 = vand.u32 4294901760, %v5009_v43  ;;  %v128_v43 = vld [vmem:[#allocation5 + $0x280] sm:$0xff] }
  0xc1   :  { %4201 = vmatprep.subr.bf16.mxu1 %v5057_v19 }
  0xc3   :  { %1351 = vmatmul.mubr.f32.vlgmr.msra.gmra.mrb[6].mxu1 %v5283_v27  ;;  %4179 = vmatpush3.bf16.msra.mxu0 %v4178_v15  ;;  %v6221_v15 = vand.u32 4294901760, %v5011_v12  ;;  %v6227_v12 = vand.u32 4294901760, %v5078_v40  ;;  %v6232_v40 = vand.u32 4294901760, %v5110_v60  ;;  %v6236_v60 = vand.u32 4294901760, %v5155_v14 }
  0xc4   :  { %4203 = vmatpush3.bf16.msra.mxu1 %v6209_v29  ;;  %4181 = vmatprep.subr.bf16.mxu0 %v4180_v23  ;;  %v6243_v14 = vand.u32 4294901760, %v6214_v8 }
  0xc5   :  { %4205 = vmatprep.subr.bf16.mxu1 %v6210_v5  ;;  %1593 = vmatprep.mubr.f32.mxu1 %v6211_v11  ;;  %v4232_v23 = vpack.c.bf16 %v6221_v15, %v6220_v34  ;;  %v6224_v11 = vand.u32 4294901760, %v5015_v33  ;;  %v1923_v34 = vand.u32 4294901760, %v128_v43  ;;  %v112_v15 = vld [vmem:[#allocation5 + $0x200] sm:$0xff] }
  0xc7   :  { %4183 = vmatpush3.bf16.msra.mxu0 %v4182_v37  ;;  %v6222_v37 = vld [vmem:[#allocation20_spill] sm:$0xff] }
  0xc8   :  { %4207 = vmatpush3.bf16.msra.mxu1 %v6212_v24  ;;  %4185 = vmatprep.subr.bf16.mxu0 %v4184_v39  ;;  %v6223_v39 = vand.u32 4294901760, %v5013_v7  ;;  %v6228_v7 = vand.u32 4294901760, %v5083_v38  ;;  %v6233_v38 = vand.u32 4294901760, %v5112_v10  ;;  %v6237_v10 = vand.u32 4294901760, %v5157_v18 }
  0xc9   :  { %4209 = vmatprep.subr.bf16.mxu1 %v6215_v44 }
  0xca   :  { %v4238_v33 = vpack.c.bf16 %v6228_v7, %v6227_v12  ;;  %v4246_v7 = vpack.c.bf16 %v6237_v10, %v6236_v60  ;;  %v133_v10 = vld [vmem:[#allocation5 + $0x2a8] sm:$0xff] }
  0xcb   :  { %4187 = vmatpush3.bf16.msra.mxu0 %v4186_v28  ;;  %v4234_v28 = vpack.c.bf16 %v6224_v11, %v6223_v39  ;;  %v4242_v39 = vpack.c.bf16 %v6233_v38, %v6232_v40  ;;  %v115_v40 = vld [vmem:[#allocation5 + $0x218] sm:$0xff]  ;;  %v6241_v38 = vand.u32 4294901760, %v5206_v52  ;;  %v6246_v52 = vand.u32 4294901760, %v5253_v6 }
  0xcc   :  { %4211 = vmatpush3.bf16.msra.mxu1 %v6216_v56  ;;  %4189 = vmatprep.subr.bf16.mxu0 %v4188_v49  ;;  %v6225_v49 = vand.u32 4294901760, %v5069_v21  ;;  %v6230_v21 = vand.u32 4294901760, %v5097_v3  ;;  %v6234_v3 = vand.u32 4294901760, %v5128_v26  ;;  %v114_v26 = vld [vmem:[#allocation5 + $0x210] sm:$0xff]  ;;  %v6248_v6 = vand.u32 4294901760, %v5268_v58 }
  0xcd   :  { %4213 = vmatprep.subr.bf16.mxu1 %v6217_v53  ;;  %v6252_v58 = vand.u32 4294901760, %v5326_v54 }
  0xcf   :  { %4191 = vmatpush3.bf16.msra.mxu0 %v4190_v32  ;;  %v6226_v32 = vand.u32 4294901760, %v5071_v25  ;;  %v6231_v25 = vand.u32 4294901760, %v5099_v63  ;;  %v6235_v63 = vand.u32 4294901760, %v5130_v9  ;;  %v6240_v9 = vand.u32 4294901760, %v5195_v30 }
  0xd0   :  { %4215 = vmatpush3.bf16.msra.mxu1 %v6218_v47  ;;  %4193 = vmatprep.subr.bf16.mxu0 %v4192_v0  ;;  %v6245_v30 = vand.u32 4294901760, %v5234_v51  ;;  %v46_v51 = vld [vmem:[#allocation2 + $0x28] sm:$0xff] }
  0xd1   :  { %4217 = vmatprep.subr.bf16.mxu1 %v6219_v31  ;;  %v4236_v0 = vpack.c.bf16 %v6226_v32, %v6225_v49  ;;  %v131_v49 = vld [vmem:[#allocation5 + $0x298] sm:$0xff]  ;;  %v4244_v32 = vpack.c.bf16 %v6235_v63, %v6234_v3  ;;  %v4250_v3 = vpack.c.bf16 %v6241_v38, %v6240_v9 }
  0xd2   :  { %v1932_v60 = vand.u32 4294901760, %v131_v49 }
  0xd3   :  { %4195 = vmatpush3.bf16.msra.mxu0 %v4194_v2  ;;  %v6229_v2 = vld [vmem:[#allocation13_spill] sm:$0xff] }
  0xd4   :  { %4219 = vmatpush3.bf16.msra.mxu1 %v5204_v61  ;;  %4197 = vmatprep.subr.bf16.mxu0 %v4196_v57  ;;  %v4240_v57 = vpack.c.bf16 %v6231_v25, %v6230_v21  ;;  %v6239_v21 = vand.u32 4294901760, %v5183_v17  ;;  %v6244_v17 = vand.u32 4294901760, %v5232_v16  ;;  %v1881_v16 = vand.u32 4294901760, %v114_v26 }
  0xd5   :  { %4221 = vmatprep.subr.bf16.mxu1 %v6222_v37  ;;  %v5520_v38 = vsub.f32 %v131_v49, %v1932_v60  ;;  %v135_v49 = vld [vmem:[#allocation5 + $0x2b8] sm:$0xff] }
  0xd7   :  { %4199 = vmatpush3.bf16.msra.mxu0 %v4198_v45  ;;  %v129_v45 = vld [vmem:[#allocation5 + $0x288] sm:$0xff] }
  0xd8   :  { %4223 = vmatpush3.bf16.msra.mxu1 %v5226_v20  ;;  %4233 = vmatprep.subr.bf16.mxu0 %v4232_v23  ;;  %v113_v23 = vld [vmem:[#allocation5 + $0x208] sm:$0xff]  ;;  %v1926_v11 = vand.u32 4294901760, %v129_v45 }
  0xd9   :  { %4225 = vmatprep.subr.bf16.mxu1 %v5259_v55  ;;  %v1878_v12 = vand.u32 4294901760, %v113_v23 }
  0xda   :  { %1489 = vmatmul.mubr.f32.vlgmr.msra.gmra.mrb[8].mxu0 %v5311_v46 }
  0xdb   :  { %4235 = vmatpush3.bf16.msra.mxu0 %v4234_v28  ;;  %1763 = vmatprep.mubr.f32.mxu0 %v6229_v2  ;;  %v130_v28 = vld [vmem:[#allocation5 + $0x290] sm:$0xff] }
  0xdc   :  { %4227 = vmatpush3.bf16.msra.mxu1 %v5340_v13  ;;  %4237 = vmatprep.subr.bf16.mxu0 %v4236_v0  ;;  %v1875_v0 = vand.u32 4294901760, %v112_v15  ;;  %v1929_v63 = vand.u32 4294901760, %v130_v28 }
  0xdd   :  { %4229 = vmatprep.subr.bf16.mxu1 %v5342_v22 }
  0xde   :  { %v5493_v46 = vsub.f32 %v112_v15, %v1875_v0 }
  0xdf   :  { %4239 = vmatpush3.bf16.msra.mxu0 %v4238_v33  ;;  %v6238_v33 = vand.u32 4294901760, %v5165_v35  ;;  %v132_v35 = vld [vmem:[#allocation5 + $0x2a0] sm:$0xff] }
  0xe0   :  { %4231 = vmatpush3.bf16.msra.mxu1 %v5365_v50  ;;  %4241 = vmatprep.subr.bf16.mxu0 %v4240_v57  ;;  %v5466_v57 = vsub.f32 %v128_v43, %v1923_v34  ;;  %v5482_v43 = vpack.c.bf16 %v6245_v30, %v6244_v17  ;;  %v6096_v17 = vand.u32 4294901760, %v5520_v38 }
  0xe1   :  { %4265 = vmatprep.subr.bf16.mxu1 %v5057_v19  ;;  %v4248_v25 = vpack.c.bf16 %v6239_v21, %v6238_v33  ;;  %v6242_v19 = vand.u32 4294901760, %v6213_v42  ;;  %v6247_v42 = vand.u32 4294901760, %v5261_v62  ;;  %v5490_v33 = vsub.f32 %v129_v45, %v1926_v11 }
  0xe2   :  { %v6249_v62 = vand.u32 4294901760, %v5297_v36  ;;  %v1935_v45 = vand.u32 4294901760, %v132_v35  ;;  %v6106_v15 = vand.u32 4294901760, %v5466_v57  ;;  %v5518_v36 = vsub.f32 %v130_v28, %v1929_v63 }
  0xe3   :  { %v4252_v18 = vpack.c.bf16 %v6243_v14, %v6242_v19  ;;  %1597 = vmatmul.mubr.f32.vlgmr.msra.gmra.mrb[8].mxu1 %v1116_v4  ;;  %4243 = vmatpush3.bf16.msra.mxu0 %v4242_v39  ;;  %v5488_v8 = vpack.c.bf16 %v6247_v42, %v6246_v52  ;;  %v5495_v4 = vsub.f32 %v113_v23, %v1878_v12  ;;  %v1884_v39 = vand.u32 4294901760, %v115_v40 }
  0xe4   :  { %4267 = vmatpush3.bf16.msra.mxu1 %v6209_v29  ;;  %4245 = vmatprep.subr.bf16.mxu0 %v4244_v32  ;;  %v5502_v21 = vpack.c.bf16 %v6249_v62, %v6248_v6  ;;  %v1938_v29 = vand.u32 4294901760, %v133_v10  ;;  %v6250_v23 = vand.u32 4294901760, %v5306_v1  ;;  %v5524_v19 = vpack.c.bf16 %v1878_v12, %v1875_v0  ;;  %v116_v1 = vld [vmem:[#allocation5 + $0x220] sm:$0xff] }
  0xe5   :  { %4269 = vmatprep.subr.bf16.mxu1 %v6210_v5  ;;  %1867 = vmatprep.mubr.f32.mxu1 %v6229_v2  ;;  %v6251_v5 = vand.u32 4294901760, %v5323_v48  ;;  %v5522_v2 = vpack.c.bf16 %v1926_v11, %v1923_v34  ;;  %v6104_v41 = vand.u32 4294901760, %v5490_v33  ;;  %v5527_v14 = vand.u32 4294901760, %v46_v51  ;;  %v134_v11 = vld [vmem:[#allocation5 + $0x2b0] sm:$0xff] }
  0xe6   :  { %v5510_v32 = vpack.c.bf16 %v6250_v23, %v1337_v59  ;;  %6253 = vst [vmem:[#allocation11_spill] sm:$0xff] %v5524_v19  ;;  %v117_v59 = vld [vmem:[#allocation5 + $0x228] sm:$0xff]  ;;  %v5530_v48 = vpack.c.bf16 %v1932_v60, %v1929_v63  ;;  %v5532_v54 = vpack.c.bf16 %v1884_v39, %v1881_v16  ;;  %v6101_v28 = vand.u32 4294901760, %v5493_v46 }
  0xe7   :  { %v5516_v9 = vpack.c.bf16 %v6252_v58, %v6251_v5  ;;  %4247 = vmatpush3.bf16.msra.mxu0 %v4246_v7  ;;  %6254 = vst [vmem:[#allocation12_spill] sm:$0xff] %v5527_v14  ;;  %v6100_v34 = vand.u32 4294901760, %v5495_v4  ;;  %v5537_v0 = vsub.f32 %v114_v26, %v1881_v16  ;;  %v5539_v12 = vsub.f32 %v115_v40, %v1884_v39 }
  0xe8   :  { %4271 = vmatpush3.bf16.msra.mxu1 %v6212_v24  ;;  %4249 = vmatprep.subr.bf16.mxu0 %v4248_v25  ;;  %6255 = vst [vmem:[#allocation16_spill] sm:$0xff] %v5530_v48  ;;  %6256 = vst [vmem:[#allocation21_spill] sm:$0xff] %v5532_v54  ;;  %v5541_v7 = vpack.c.bf16 %v1938_v29, %v1935_v45  ;;  %v2102_v24 = vsub.f32 %v5466_v57, %v6106_v15  ;;  %v1887_v25 = vand.u32 4294901760, %v116_v1 }
  0xe9   :  { %4273 = vmatprep.subr.bf16.mxu1 %v6215_v44  ;;  %v1890_v63 = vand.u32 4294901760, %v117_v59  ;;  %v6097_v60 = vand.u32 4294901760, %v5518_v36  ;;  %v2109_v44 = vsub.f32 %v5490_v33, %v6104_v41  ;;  %v1941_v26 = vand.u32 4294901760, %v134_v11 }
  0xea   :  { %6257 = vst [vmem:[#allocation22_spill] sm:$0xff] %v5541_v7  ;;  %v1944_v40 = vand.u32 4294901760, %v135_v49  ;;  %v5552_v30 = vsub.f32 %v46_v51, %v5527_v14  ;;  %v5555_v52 = vsub.f32 %v132_v35, %v1935_v45  ;;  %v1990_v42 = vsub.f32 %v5493_v46, %v6101_v28  ;;  %v118_v51 = vld [vmem:[#allocation5 + $0x230] sm:$0xff]  ;;  %v121_v28 = vld [vmem:[#allocation5 + $0x248] sm:$0xff] }
  0xeb   :  { %4251 = vmatpush3.bf16.msra.mxu0 %v4250_v3  ;;  %v1997_v3 = vsub.f32 %v5495_v4, %v6100_v34  ;;  %v5564_v16 = vsub.f32 %v133_v10, %v1938_v29  ;;  %v2103_v39 = vand.u32 4294901760, %v2102_v24  ;;  %v6099_v6 = vand.u32 4294901760, %v5537_v0  ;;  %v119_v10 = vld [vmem:[#allocation5 + $0x238] sm:$0xff] }
  0xec   :  { %4275 = vmatpush3.bf16.msra.mxu1 %v6216_v56  ;;  %4253 = vmatprep.subr.bf16.mxu0 %v4252_v18  ;;  %v6098_v56 = vand.u32 4294901760, %v5539_v12  ;;  %v5568_v18 = vpack.c.bf16 %v1890_v63, %v1887_v25  ;;  %v5570_v35 = vsub.f32 %v116_v1, %v1887_v25  ;;  %v2116_v62 = vsub.f32 %v5518_v36, %v6097_v60  ;;  %v137_v60 = vld [vmem:[#allocation5 + $0x2c8] sm:$0xff] }
  0xed   :  { %4277 = vmatprep.subr.bf16.mxu1 %v6217_v53  ;;  %v2123_v53 = vsub.f32 %v5520_v38, %v6096_v17  ;;  %v2110_v45 = vand.u32 4294901760, %v2109_v44  ;;  %v5579_v29 = vsub.f32 %v117_v59, %v1890_v63  ;;  %v5581_v23 = vpack.c.bf16 %v1944_v40, %v1941_v26  ;;  %v136_v17 = vld [vmem:[#allocation5 + $0x2c0] sm:$0xff] }
  0xee   :  { %6258 = vst [vmem:[#allocation14_spill] sm:$0xff] %v5568_v18  ;;  %v6107_v5 = vand.u32 4294901760, %v5552_v30  ;;  %v1991_v58 = vand.u32 4294901760, %v1990_v42  ;;  %v1998_v1 = vand.u32 4294901760, %v1997_v3  ;;  %v5586_v24 = vsub.f32 %v134_v11, %v1941_v26  ;;  %v120_v42 = vld [vmem:[#allocation5 + $0x240] sm:$0xff] }
  0xef   :  { %4255 = vmatpush3.bf16.msra.mxu0 %v5482_v43  ;;  %6259 = vst [vmem:[#allocation15_spill] sm:$0xff] %v5581_v23  ;;  %v1893_v25 = vand.u32 4294901760, %v118_v51  ;;  %v5589_v43 = vsub.f32 %v135_v49, %v1944_v40  ;;  %v1896_v59 = vand.u32 4294901760, %v119_v10  ;;  %v2004_v63 = vsub.f32 %v5537_v0, %v6099_v6 }
  0xf0   :  { %4279 = vmatpush3.bf16.msra.mxu1 %v6218_v47  ;;  %4257 = vmatprep.subr.bf16.mxu0 %v5488_v8  ;;  %v2011_v47 = vsub.f32 %v5539_v12, %v6098_v56  ;;  %v2117_v8 = vand.u32 4294901760, %v2116_v62  ;;  %v2124_v44 = vand.u32 4294901760, %v2123_v53  ;;  %v6103_v11 = vand.u32 4294901760, %v5555_v52 }
  0xf1   :  { %4281 = vmatprep.subr.bf16.mxu1 %v6219_v31  ;;  %v6102_v26 = vand.u32 4294901760, %v5564_v16  ;;  %v5600_v31 = vpack.c.bf16 %v2110_v45, %v2103_v39  ;;  %v1947_v49 = vand.u32 4294901760, %v136_v17  ;;  %v1950_v40 = vand.u32 4294901760, %v137_v60 }
  0xf2   :  { %v1973_v3 = vsub.f32 %v5552_v30, %v6107_v5  ;;  %v5607_v62 = vpack.c.bf16 %v1998_v1, %v1991_v58  ;;  %v5609_v53 = vsub.f32 %v118_v51, %v1893_v25  ;;  %v6105_v56 = vand.u32 4294901760, %v5570_v35  ;;  %v139_v1 = vld [vmem:[#allocation5 + $0x2d8] sm:$0xff] }
  0xf3   :  { %4259 = vmatpush3.bf16.msra.mxu0 %v5502_v21  ;;  %v6108_v21 = vand.u32 4294901760, %v5579_v29  ;;  %v5614_v39 = vpack.c.bf16 %v1896_v59, %v1893_v25  ;;  %v5616_v45 = vsub.f32 %v119_v10, %v1896_v59  ;;  %v2005_v6 = vand.u32 4294901760, %v2004_v63  ;;  %v138_v10 = vld [vmem:[#allocation5 + $0x2d0] sm:$0xff]  ;;  %v123_v5 = vld [vmem:[#allocation5 + $0x258] sm:$0xff] }
  0xf4   :  { %4283 = vmatpush3.bf16.msra.mxu1 %v5204_v61  ;;  %4261 = vmatprep.subr.bf16.mxu0 %v5510_v32  ;;  %v2012_v34 = vand.u32 4294901760, %v2011_v47  ;;  %v5618_v61 = vpack.c.bf16 %v2124_v44, %v2117_v8  ;;  %v2130_v32 = vsub.f32 %v5555_v52, %v6103_v11  ;;  %v2137_v51 = vsub.f32 %v5564_v16, %v6102_v26 }
  0xf5   :  { %4285 = vmatprep.subr.bf16.mxu1 %v6222_v37  ;;  %6260 = vst [vmem:[#allocation17_spill] sm:$0xff] %v5614_v39  ;;  %v1899_v58 = vand.u32 4294901760, %v120_v42  ;;  %v5627_v37 = vpack.c.bf16 %v1950_v40, %v1947_v49  ;;  %v6110_v25 = vand.u32 4294901760, %v5586_v24  ;;  %v6109_v59 = vand.u32 4294901760, %v5589_v43 }
  0xf6   :  { %v1974_v63 = vand.u32 4294901760, %v1973_v3  ;;  %v5633_v47 = vsub.f32 %v136_v17, %v1947_v49  ;;  %v1902_v8 = vand.u32 4294901760, %v121_v28  ;;  %v2025_v44 = vsub.f32 %v5579_v29, %v6108_v21 }
  0xf7   :  { %4263 = vmatpush3.bf16.msra.mxu0 %v5516_v9  ;;  %6261 = vst [vmem:[#allocation18_spill] sm:$0xff] %v5627_v37  ;;  %v2018_v9 = vsub.f32 %v5570_v35, %v6105_v56  ;;  %v5642_v26 = vpack.c.bf16 %v2012_v34, %v2005_v6  ;;  %v5644_v3 = vsub.f32 %v137_v60, %v1950_v40  ;;  %v6113_v11 = vand.u32 4294901760, %v5609_v53 }
  0xf8   :  { %4287 = vmatpush3.bf16.msra.mxu1 %v5226_v20  ;;  %4297 = vmatprep.subr.bf16.mxu0 %v5522_v2  ;;  %v122_v20 = vld [vmem:[#allocation5 + $0x250] sm:$0xff]  ;;  %v6116_v17 = vand.u32 4294901760, %v5616_v45  ;;  %v2131_v49 = vand.u32 4294901760, %v2130_v32  ;;  %v2138_v41 = vand.u32 4294901760, %v2137_v51  ;;  %v1953_v56 = vand.u32 4294901760, %v138_v10 }
  0xf9   :  { %4289 = vmatprep.subr.bf16.mxu1 %v5259_v55  ;;  %v1956_v15 = vand.u32 4294901760, %v139_v1  ;;  %v5650_v21 = vsub.f32 %v120_v42, %v1899_v58  ;;  %v2144_v55 = vsub.f32 %v5586_v24, %v6110_v25  ;;  %v2151_v34 = vsub.f32 %v5589_v43, %v6109_v59  ;;  %v140_v59 = vld [vmem:[#allocation5 + $0x2e0] sm:$0xff] }
  0xfa   :  { %1765 = vmatmul.mubr.f32.vlgmr.msra.gmra.mrb[10].mxu0 %v5283_v27  ;;  %v5660_v60 = vpack.c.bf16 %v1902_v8, %v1899_v58  ;;  %v2019_v6 = vand.u32 4294901760, %v2018_v9  ;;  %v2026_v40 = vand.u32 4294901760, %v2025_v44  ;;  %v1905_v32 = vand.u32 4294901760, %v122_v20  ;;  %v5688_v25 = vld [vmem:[#allocation5 + $0x260] sm:$0xff] }
  0xfb   :  { %4299 = vmatpush3.bf16.msra.mxu0 %v5524_v19  ;;  %1975 = vmatprep.mubr.f32.mxu0 %v1974_v63  ;;  %v1908_v42 = vand.u32 4294901760, %v123_v5  ;;  %v2032_v51 = vsub.f32 %v5609_v53, %v6113_v11  ;;  %v2039_v63 = vsub.f32 %v5616_v45, %v6116_v17  ;;  %v5670_v58 = vpack.c.bf16 %v2138_v41, %v2131_v49 }
  0xfc   :  { %4291 = vmatpush3.bf16.msra.mxu1 %v5340_v13  ;;  %4301 = vmatprep.subr.bf16.mxu0 %v5530_v48  ;;  %v141_v13 = vld [vmem:[#allocation5 + $0x2e8] sm:$0xff]  ;;  %v5672_v9 = vsub.f32 %v121_v28, %v1902_v8  ;;  %v5674_v44 = vpack.c.bf16 %v1956_v15, %v1953_v56  ;;  %v5678_v48 = vsub.f32 %v138_v10, %v1953_v56  ;;  %v2145_v19 = vand.u32 4294901760, %v2144_v55 }
  0xfd   :  { %4293 = vmatprep.subr.bf16.mxu1 %v5342_v22  ;;  %v6117_v22 = vand.u32 4294901760, %v5644_v3  ;;  %v5680_v11 = vsub.f32 %v139_v1, %v1956_v15  ;;  %v2152_v17 = vand.u32 4294901760, %v2151_v34  ;;  %v5684_v41 = vpack.c.bf16 %v2026_v40, %v2019_v6  ;;  %v5696_v55 = vld [vmem:[#allocation5 + $0x268] sm:$0xff]  ;;  %v5705_v40 = vld [vmem:[#allocation5 + $0x2f0] sm:$0xff] }
  0xfe   :  { %6262 = vst [vmem:[#allocation19_spill] sm:$0xff] %v5678_v48  ;;  %v5686_v28 = vsub.f32 %v122_v20, %v1905_v32  ;;  %v1959_v8 = vand.u32 4294901760, %v140_v59  ;;  %v1962_v49 = vand.u32 4294901760, %v141_v13  ;;  %v5691_v56 = vpack.c.bf16 %v1908_v42, %v1905_v32  ;;  %v5707_v32 = vld [vmem:[#allocation5 + $0x2f8] sm:$0xff] }
  0xff   :  { %4303 = vmatpush3.bf16.msra.mxu0 %v5532_v54  ;;  %6263 = vst [vmem:[#allocation20_spill] sm:$0xff] %v5680_v11  ;;  %v2033_v15 = vand.u32 4294901760, %v2032_v51  ;;  %v2040_v10 = vand.u32 4294901760, %v2039_v63  ;;  %v6264_v1 = vand.u32 4294901760, %v5633_v47  ;;  %v5698_v34 = vsub.f32 %v123_v5, %v1908_v42 }
 0x100   :  { %4295 = vmatpush3.bf16.msra.mxu1 %v5365_v50  ;;  %4305 = vmatprep.subr.bf16.mxu0 %v5541_v7  ;;  %v2165_v20 = vsub.f32 %v5644_v3, %v6117_v22  ;;  %v4340_v51 = vpack.c.bf16 %v2152_v17, %v2145_v19  ;;  %v1911_v5 = vand.u32 4294901760, %v5688_v25  ;;  %v5716_v22 = vpack.c.bf16 %v1962_v49, %v1959_v8 }
 0x101   :  { %4329 = vmatprep.subr.bf16.mxu1 %v5600_v31  ;;  %v2158_v50 = vsub.f32 %v5633_v47, %v6264_v1  ;;  %v45_v1 = vld [vmem:[#allocation2 + $0x20] sm:$0xff]  ;;  %v5718_v31 = vsub.f32 %v140_v59, %v1959_v8  ;;  %v5720_v6 = vsub.f32 %v141_v13, %v1962_v49  ;;  %v4342_v19 = vpack.c.bf16 %v2040_v10, %v2033_v15 }
 0x102   :  { %v1965_v42 = vand.u32 4294901760, %v5705_v40  ;;  %v1968_v63 = vand.u32 4294901760, %v5707_v32  ;;  %v2166_v59 = vand.u32 4294901760, %v2165_v20  ;;  %v6265_v13 = vand.u32 4294901760, %v5650_v21 }
 0x103   :  { %1869 = vmatmul.mubr.f32.vlgmr.msra.gmra.mrb[10].mxu1 %v5283_v27  ;;  %4307 = vmatpush3.bf16.msra.mxu0 %v5568_v18  ;;  %v1914_v27 = vand.u32 4294901760, %v5696_v55  ;;  %v2159_v17 = vand.u32 4294901760, %v2158_v50  ;;  %v5726_v18 = vld [vmem:[#allocation5 + $0x270] sm:$0xff]  ;;  %v6266_v49 = vand.u32 4294901760, %v5672_v9  ;;  %v5737_v15 = vand.u32 4294901760, %v45_v1 }
 0x104   :  { %4331 = vmatpush3.bf16.msra.mxu1 %v5607_v62  ;;  %4309 = vmatprep.subr.bf16.mxu0 %v5581_v23  ;;  %v5728_v62 = vld [vmem:[#allocation5 + $0x278] sm:$0xff]  ;;  %v2046_v8 = vsub.f32 %v5650_v21, %v6265_v13  ;;  %v6267_v10 = vand.u32 4294901760, %v5678_v48  ;;  %v6268_v23 = vand.u32 4294901760, %v5680_v11  ;;  %v5763_v13 = vsub.f32 %v5707_v32, %v1968_v63 }
 0x105   :  { %4333 = vmatprep.subr.bf16.mxu1 %v5618_v61  ;;  %2211 = vmatprep.mubr.f32.mxu1 %v5527_v14  ;;  %v2053_v61 = vsub.f32 %v5672_v9, %v6266_v49  ;;  %v5751_v49 = vsub.f32 %v5688_v25, %v1911_v5  ;;  %v1920_v7 = vand.u32 4294901760, %v5728_v62  ;;  %v6136_v25 = vand.u32 4294901760, %v5720_v6 }
 0x106   :  { %v2172_v50 = vsub.f32 %v5678_v48, %v6267_v10  ;;  %v2179_v20 = vsub.f32 %v5680_v11, %v6268_v23  ;;  %v1917_v10 = vand.u32 4294901760, %v5726_v18  ;;  %v5760_v23 = vsub.f32 %v5705_v40, %v1965_v42 }
 0x107   :  { %4311 = vmatpush3.bf16.msra.mxu0 %v5614_v39  ;;  %v5754_v39 = vsub.f32 %v5696_v55, %v1914_v27  ;;  %v4344_v14 = vpack.c.bf16 %v2166_v59, %v2159_v17  ;;  %v2054_v55 = vand.u32 4294901760, %v2053_v61  ;;  %v5768_v11 = vsub.f32 %v45_v1, %v5737_v15 }
 0x108   :  { %4335 = vmatpush3.bf16.msra.mxu1 %v5642_v26  ;;  %4313 = vmatprep.subr.bf16.mxu0 %v5627_v37  ;;  %v2047_v37 = vand.u32 4294901760, %v2046_v8  ;;  %v2173_v48 = vand.u32 4294901760, %v2172_v50  ;;  %v6269_v40 = vand.u32 4294901760, %v5686_v28  ;;  %v6270_v32 = vand.u32 4294901760, %v5698_v34 }
 0x109   :  { %4337 = vmatprep.subr.bf16.mxu1 %v5670_v58  ;;  %v2180_v58 = vand.u32 4294901760, %v2179_v20  ;;  %v5780_v17 = vsub.f32 %v5726_v18, %v1917_v10  ;;  %v5783_v1 = vsub.f32 %v5728_v62, %v1920_v7  ;;  %v6271_v61 = vand.u32 4294901760, %v5718_v31 }
 0x10a   :  { %v2060_v54 = vsub.f32 %v5686_v28, %v6269_v40  ;;  %v2067_v26 = vsub.f32 %v5698_v34, %v6270_v32  ;;  %v6138_v18 = vand.u32 4294901760, %v5763_v13  ;;  %v5795_v40 = vpack.c.bf16 %v1914_v27, %v1911_v5 }
 0x10b   :  { %4315 = vmatpush3.bf16.msra.mxu0 %v5660_v60  ;;  %v2186_v50 = vsub.f32 %v5718_v31, %v6271_v61  ;;  %v5797_v62 = vpack.c.bf16 %v1968_v63, %v1965_v42  ;;  %v1978_v32 = vand.u32 4294901760, %v5768_v11  ;;  %v4348_v8 = vpack.c.bf16 %v2180_v58, %v2173_v48 }
 0x10c   :  { %4339 = vmatpush3.bf16.msra.mxu1 %v5684_v41  ;;  %4317 = vmatprep.subr.bf16.mxu0 %v5674_v44  ;;  %v2193_v41 = vsub.f32 %v5720_v6, %v6136_v25  ;;  %v2061_v59 = vand.u32 4294901760, %v2060_v54  ;;  %v2068_v61 = vand.u32 4294901760, %v2067_v26  ;;  %v6272_v25 = vand.u32 4294901760, %v5751_v49 }
 0x10d   :  { %4341 = vmatprep.subr.bf16.mxu1 %v4340_v51  ;;  %v4346_v51 = vpack.c.bf16 %v2054_v55, %v2047_v37  ;;  %v6273_v5 = vand.u32 4294901760, %v5754_v39  ;;  %v6137_v63 = vand.u32 4294901760, %v5780_v17  ;;  %v6139_v27 = vand.u32 4294901760, %v5783_v1 }
 0x10e   :  { %v2074_v20 = vsub.f32 %v5751_v49, %v6272_v25  ;;  %v2187_v37 = vand.u32 4294901760, %v2186_v50  ;;  %v2194_v48 = vand.u32 4294901760, %v2193_v41  ;;  %v6274_v54 = vand.u32 4294901760, %v5760_v23 }
 0x10f   :  { %4319 = vmatpush3.bf16.msra.mxu0 %v5691_v56  ;;  %v2081_v42 = vsub.f32 %v5754_v39, %v6273_v5  ;;  %v2207_v26 = vsub.f32 %v5763_v13, %v6138_v18  ;;  %v1979_v25 = vsub.f32 %v5768_v11, %v1978_v32  ;;  %v5820_v55 = vpack.c.bf16 %v1920_v7, %v1917_v10 }
 0x110   :  { %4343 = vmatpush3.bf16.msra.mxu1 %v4342_v19  ;;  %4321 = vmatprep.subr.bf16.mxu0 %v5716_v22  ;;  %v2200_v19 = vsub.f32 %v5760_v23, %v6274_v54  ;;  %v4350_v58 = vpack.c.bf16 %v2068_v61, %v2061_v59  ;;  %v2075_v50 = vand.u32 4294901760, %v2074_v20  ;;  %v2088_v5 = vsub.f32 %v5780_v17, %v6137_v63 }
 0x111   :  { %4345 = vmatprep.subr.bf16.mxu1 %v4344_v14  ;;  %v4360_v14 = vpack.c.bf16 %v5490_v33, %v5466_v57  ;;  %v2082_v41 = vand.u32 4294901760, %v2081_v42  ;;  %v2095_v54 = vsub.f32 %v5783_v1, %v6139_v27  ;;  %v4352_v7 = vpack.c.bf16 %v2194_v48, %v2187_v37 }
 0x112   :  { %v2201_v10 = vand.u32 4294901760, %v2200_v19  ;;  %v2208_v59 = vand.u32 4294901760, %v2207_v26  ;;  %v1980_v61 = vand.u32 4294901760, %v1979_v25  ;;  %v4364_v42 = vpack.c.bf16 %v5520_v38, %v5518_v36  ;;  %v6276_v25 = vld [vmem:[#allocation16_spill] sm:$0xff] }
 0x113   :  { %4323 = vmatpush3.bf16.msra.mxu0 %v5795_v40  ;;  %v4354_v20 = vpack.c.bf16 %v2082_v41, %v2075_v50  ;;  %v2089_v63 = vand.u32 4294901760, %v2088_v5  ;;  %v2096_v18 = vand.u32 4294901760, %v2095_v54  ;;  %v4368_v48 = vpack.c.bf16 %v5564_v16, %v5555_v52  ;;  %v6278_v50 = vld [vmem:[#allocation21_spill] sm:$0xff]  ;;  %v6279_v41 = vld [vmem:[#allocation19_spill] sm:$0xff]  ;;  %v6280_v5 = vld [vmem:[#allocation20_spill] sm:$0xff] }
 0x114   :  { %4347 = vmatpush3.bf16.msra.mxu1 %v4346_v51  ;;  %4325 = vmatprep.subr.bf16.mxu0 %v5797_v62  ;;  %v4362_v51 = vpack.c.bf16 %v5495_v4, %v5493_v46  ;;  %v4356_v27 = vpack.c.bf16 %v2208_v59, %v2201_v10  ;;  %v4370_v19 = vpack.c.bf16 %v5579_v29, %v5570_v35  ;;  %v6282_v59 = vld [vmem:[#allocation14_spill] sm:$0xff] }
 0x115   :  { %4349 = vmatprep.subr.bf16.mxu1 %v4348_v8  ;;  %v4366_v8 = vpack.c.bf16 %v5539_v12, %v5537_v0  ;;  %v4358_v37 = vpack.c.bf16 %v2096_v18, %v2089_v63  ;;  %v4372_v26 = vpack.c.bf16 %v5589_v43, %v5586_v24  ;;  %v4374_v18 = vpack.c.bf16 %v5616_v45, %v5609_v53  ;;  %v6275_v63 = vld [vmem:[#allocation11_spill] sm:$0xff] }
 0x116   :  { %v4380_v54 = vpack.c.bf16 %v6280_v5, %v6279_v41  ;;  %v4382_v10 = vpack.c.bf16 %v5698_v34, %v5686_v28 }
 0x117   :  { %4327 = vmatpush3.bf16.msra.mxu0 %v5820_v55 }
 0x118   :  { %4351 = vmatpush3.bf16.msra.mxu1 %v4350_v58  ;;  %4361 = vmatprep.subr.bf16.mxu0 %v4360_v14  ;;  %v6277_v58 = vand.u32 4294901760, %v5552_v30  ;;  %v4378_v14 = vpack.c.bf16 %v5672_v9, %v5650_v21 }
 0x119   :  { %4353 = vmatprep.subr.bf16.mxu1 %v4352_v7  ;;  %v6281_v7 = vld [vmem:[#allocation22_spill] sm:$0xff] }
 0x11a   :  { %1981 = vmatmul.mubr.f32.vlgmr.msra.gmra.mrb[12].mxu0 %v1980_v61  ;;  %v6283_v61 = vld [vmem:[#allocation15_spill] sm:$0xff] }
 0x11b   :  { %4363 = vmatpush3.bf16.msra.mxu0 %v4362_v51  ;;  %2348 = vmatprep.mubr.f32.mxu0 %v5552_v30  ;;  %v4384_v30 = vpack.c.bf16 %v5720_v6, %v5718_v31 }
 0x11c   :  { %4355 = vmatpush3.bf16.msra.mxu1 %v4354_v20  ;;  %4365 = vmatprep.subr.bf16.mxu0 %v4364_v42  ;;  %v4386_v42 = vpack.c.bf16 %v5754_v39, %v5751_v49 }
 0x11d   :  { %4357 = vmatprep.subr.bf16.mxu1 %v4356_v27  ;;  %v4376_v27 = vpack.c.bf16 %v5644_v3, %v5633_v47 }
 0x11f   :  { %4367 = vmatpush3.bf16.msra.mxu0 %v4366_v8 }
 0x120   :  { %4359 = vmatpush3.bf16.msra.mxu1 %v4358_v37  ;;  %4369 = vmatprep.subr.bf16.mxu0 %v4368_v48  ;;  %v6284_v37 = vld [vmem:[#allocation17_spill] sm:$0xff]  ;;  %v4388_v48 = vpack.c.bf16 %v5763_v13, %v5760_v23 }
 0x121   :  { %4393 = vmatprep.subr.bf16.mxu1 %v5522_v2 }
 0x123   :  { %2213 = vmatmul.mubr.f32.vlgmr.msra.gmra.mrb[12].mxu1 %v5737_v15  ;;  %4371 = vmatpush3.bf16.msra.mxu0 %v4370_v19  ;;  %v6285_v19 = vld [vmem:[#allocation18_spill] sm:$0xff] }
 0x124   :  { %4395 = vmatpush3.bf16.msra.mxu1 %v6275_v63  ;;  %4373 = vmatprep.subr.bf16.mxu0 %v4372_v26  ;;  %v4390_v26 = vpack.c.bf16 %v5783_v1, %v5780_v17 }
 0x125   :  { %4397 = vmatprep.subr.bf16.mxu1 %v6276_v25  ;;  %2455 = vmatprep.mubr.f32.mxu1 %v6277_v58 }
 0x127   :  { %4375 = vmatpush3.bf16.msra.mxu0 %v4374_v18  ;;  %v6286_v18 = vand.u32 4294901760, %v5466_v57  ;;  %v6291_v57 = vand.u32 4294901760, %v5520_v38  ;;  %v6296_v38 = vand.u32 4294901760, %v5564_v16  ;;  %v6302_v16 = vand.u32 4294901760, %v5616_v45 }
 0x128   :  { %4399 = vmatpush3.bf16.msra.mxu1 %v6278_v50  ;;  %4377 = vmatprep.subr.bf16.mxu0 %v4376_v27  ;;  %v6287_v27 = vand.u32 4294901760, %v5490_v33 }
 0x129   :  { %4401 = vmatprep.subr.bf16.mxu1 %v6281_v7 }
 0x12a   :  { %v4424_v58 = vpack.c.bf16 %v6287_v27, %v6286_v18  ;;  %v6294_v18 = vld [vmem:[#allocation12_spill] sm:$0xff] }
 0x12b   :  { %4379 = vmatpush3.bf16.msra.mxu0 %v4378_v14 }
 0x12c   :  { %4403 = vmatpush3.bf16.msra.mxu1 %v6282_v59  ;;  %4381 = vmatprep.subr.bf16.mxu0 %v4380_v54 }
 0x12d   :  { %4405 = vmatprep.subr.bf16.mxu1 %v6283_v61  ;;  %v3254_v51 = vpop.f32.mrb[0].mxu0 }
 0x12e   :  { %v3255_v20 = vpop.f32.mrb[1].mxu0 }
 0x12f   :  { %4383 = vmatpush3.bf16.msra.mxu0 %v4382_v10  ;;  %v3256_v8 = vadd.f32 %v3255_v20, %v3254_v51  ;;  %v6288_v10 = vand.u32 4294901760, %v5493_v46  ;;  %v6292_v46 = vand.u32 4294901760, %v5537_v0  ;;  %v6298_v0 = vand.u32 4294901760, %v5579_v29 }
 0x130   :  { %4407 = vmatpush3.bf16.msra.mxu1 %v6284_v37  ;;  %4385 = vmatprep.subr.bf16.mxu0 %v4384_v30  ;;  %v6289_v30 = vand.u32 4294901760, %v5495_v4  ;;  %v6293_v4 = vand.u32 4294901760, %v5539_v12  ;;  %v6299_v12 = vand.u32 4294901760, %v5586_v24  ;;  %v6303_v29 = vand.u32 4294901760, %v5633_v47 }
 0x131   :  { %4409 = vmatprep.subr.bf16.mxu1 %v6285_v19  ;;  %v6304_v24 = vand.u32 4294901760, %v5644_v3  ;;  %v6307_v47 = vand.u32 4294901760, %v6279_v41  ;;  %v6308_v3 = vand.u32 4294901760, %v6280_v5  ;;  %v6312_v41 = vand.u32 4294901760, %v5720_v6 }
 0x132   :  { %v4426_v51 = vpack.c.bf16 %v6289_v30, %v6288_v10  ;;  %v47_v10 = vld [vmem:[#allocation2 + $0x30] sm:$0xff]  ;;  %v6315_v6 = vand.u32 4294901760, %v5760_v23 }
 0x133   :  { %4387 = vmatpush3.bf16.msra.mxu0 %v4386_v42  ;;  %v6290_v42 = vand.u32 4294901760, %v5518_v36  ;;  %v6295_v36 = vand.u32 4294901760, %v5555_v52  ;;  %v6301_v52 = vand.u32 4294901760, %v5609_v53  ;;  %v148_v45 = vsel %vm146_vm0, %v47_v10, 0 }
 0x134   :  { %4411 = vmatpush3.bf16.msra.mxu1 %v5660_v60  ;;  %4389 = vmatprep.subr.bf16.mxu0 %v4388_v48  ;;  %v5936_v30 = vand.u32 4294901760, %v148_v45 }
 0x135   :  { %4413 = vmatprep.subr.bf16.mxu1 %v5674_v44  ;;  %v4428_v33 = vpack.c.bf16 %v6291_v57, %v6290_v42  ;;  %v4432_v27 = vpack.c.bf16 %v6296_v38, %v6295_v36 }
 0x136   :  { %v3289_v14 = vpop.f32.mrb[0].mxu1 }
 0x137   :  { %v3290_v54 = vpop.f32.mrb[1].mxu1  ;;  %4391 = vmatpush3.bf16.msra.mxu0 %v4390_v26  ;;  %v4430_v26 = vpack.c.bf16 %v6293_v4, %v6292_v46 }
 0x138   :  { %v3291_v20 = vadd.f32 %v3290_v54, %v3289_v14  ;;  %4415 = vmatpush3.bf16.msra.mxu1 %v5691_v56  ;;  %4425 = vmatprep.subr.bf16.mxu0 %v4424_v58  ;;  %v6300_v14 = vand.u32 4294901760, %v5589_v43  ;;  %v4440_v43 = vpack.c.bf16 %v6304_v24, %v6303_v29 }
 0x139   :  { %4417 = vmatprep.subr.bf16.mxu1 %v5716_v22 }
 0x13a   :  { %v491_v48 = vadd.f32 %v3291_v20, %v3256_v8  ;;  %2351 = vmatmul.mubr.f32.vlgmr.msra.gmra.mrb[14].mxu0 %v5768_v11  ;;  %v6297_v8 = vand.u32 4294901760, %v5570_v35  ;;  %v4436_v54 = vpack.c.bf16 %v6300_v14, %v6299_v12  ;;  %v4438_v35 = vpack.c.bf16 %v6302_v16, %v6301_v52 }
 0x13b   :  { %4427 = vmatpush3.bf16.msra.mxu0 %v4426_v51  ;;  %2625 = vmatprep.mubr.f32.mxu0 %v6294_v18  ;;  %v6306_v11 = vand.u32 4294901760, %v5672_v9  ;;  %v6310_v9 = vand.u32 4294901760, %v5698_v34  ;;  %v6313_v34 = vand.u32 4294901760, %v5751_v49  ;;  %v6317_v49 = vand.u32 4294901760, %v5780_v17 }
 0x13c   :  { %4419 = vmatpush3.bf16.msra.mxu1 %v5795_v40  ;;  %4429 = vmatprep.subr.bf16.mxu0 %v4428_v33  ;;  %v4434_v58 = vpack.c.bf16 %v6298_v0, %v6297_v8  ;;  %v5949_v33 = vsub.f32 %v148_v45, %v5936_v30  ;;  %v4590_v17 = vmov 0.0|0.0  }
 0x13d   :  { %4421 = vmatprep.subr.bf16.mxu1 %v5797_v62 }
 0x13e   :  { %v2805_v36 = vand.u32 4294901760, %v5949_v33 }
 0x13f   :  { %4431 = vmatpush3.bf16.msra.mxu0 %v4430_v26 }
 0x140   :  { %4423 = vmatpush3.bf16.msra.mxu1 %v5820_v55  ;;  %4433 = vmatprep.subr.bf16.mxu0 %v4432_v27 }
 0x141   :  { %4457 = vmatprep.subr.bf16.mxu1 %v5522_v2  ;;  %v6305_v2 = vand.u32 4294901760, %v5650_v21  ;;  %v6309_v21 = vand.u32 4294901760, %v5686_v28 }
 0x143   :  { %2459 = vmatmul.mubr.f32.vlgmr.msra.gmra.mrb[14].mxu1 %v1978_v32  ;;  %4435 = vmatpush3.bf16.msra.mxu0 %v4434_v58  ;;  %v4442_v53 = vpack.c.bf16 %v6306_v11, %v6305_v2  ;;  %v4444_v32 = vpack.c.bf16 %v6308_v3, %v6307_v47  ;;  %v4446_v51 = vpack.c.bf16 %v6310_v9, %v6309_v21 }
 0x144   :  { %4459 = vmatpush3.bf16.msra.mxu1 %v6275_v63  ;;  %4437 = vmatprep.subr.bf16.mxu0 %v4436_v54  ;;  %v144_v63 = vld [vmem:[#allocation5 + $0x300] sm:$0xff] }
 0x145   :  { %4461 = vmatprep.subr.bf16.mxu1 %v6276_v25  ;;  %2729 = vmatprep.mubr.f32.mxu1 %v6294_v18  ;;  %v145_v25 = vld [vmem:[#allocation5 + $0x308] sm:$0xff]  ;;  %v2737_v20 = vand.u32 4294901760, %v144_v63 }
 0x146   :  { %v2740_v42 = vand.u32 4294901760, %v145_v25 }
 0x147   :  { %4439 = vmatpush3.bf16.msra.mxu0 %v4438_v35  ;;  %v2815_v4 = vsub.f32 %v144_v63, %v2737_v20 }
 0x148   :  { %4463 = vmatpush3.bf16.msra.mxu1 %v6278_v50  ;;  %4441 = vmatprep.subr.bf16.mxu0 %v4440_v43  ;;  %v6311_v50 = vand.u32 4294901760, %v5718_v31  ;;  %v6316_v31 = vand.u32 4294901760, %v5763_v13  ;;  %v2822_v26 = vsub.f32 %v145_v25, %v2740_v42 }
 0x149   :  { %4465 = vmatprep.subr.bf16.mxu1 %v6281_v7  ;;  %v2816_v27 = vand.u32 4294901760, %v2815_v4 }
 0x14a   :  { %v4448_v5 = vpack.c.bf16 %v6312_v41, %v6311_v50  ;;  %v2823_v23 = vand.u32 4294901760, %v2822_v26  ;;  %v4495_v12 = vpack.c.bf16 %v2822_v26, %v2815_v4 }
 0x14b   :  { %4443 = vmatpush3.bf16.msra.mxu0 %v4442_v53  ;;  %v2817_v8 = vsub.f32 %v2815_v4, %v2816_v27 }
 0x14c   :  { %4467 = vmatpush3.bf16.msra.mxu1 %v6282_v59  ;;  %4445 = vmatprep.subr.bf16.mxu0 %v4444_v32  ;;  %v6314_v59 = vand.u32 4294901760, %v5754_v39  ;;  %v6318_v39 = vand.u32 4294901760, %v5783_v1  ;;  %v2824_v1 = vsub.f32 %v2822_v26, %v2823_v23 }
 0x14d   :  { %v3324_v7 = vpop.f32.mrb[2].mxu0  ;;  %4469 = vmatprep.subr.bf16.mxu1 %v6283_v61  ;;  %v4452_v61 = vpack.c.bf16 %v6316_v31, %v6315_v6  ;;  %v2818_v14 = vand.u32 4294901760, %v2817_v8 }
 0x14e   :  { %v3325_v57 = vpop.f32.mrb[3].mxu0  ;;  %v4450_v46 = vpack.c.bf16 %v6314_v59, %v6313_v34  ;;  %v4454_v38 = vpack.c.bf16 %v6318_v39, %v6317_v49  ;;  %v2825_v54 = vand.u32 4294901760, %v2824_v1 }
 0x14f   :  { %v3326_v28 = vadd.f32 %v3325_v57, %v3324_v7  ;;  %4447 = vmatpush3.bf16.msra.mxu0 %v4446_v51 }
 0x150   :  { %4471 = vmatpush3.bf16.msra.mxu1 %v6284_v37  ;;  %4449 = vmatprep.subr.bf16.mxu0 %v4448_v5  ;;  %v2806_v37 = vsub.f32 %v5949_v33, %v2805_v36 }
 0x151   :  { %v629_v18 = vadd.f32 %v3326_v28, %v491_v48  ;;  %4473 = vmatprep.subr.bf16.mxu1 %v6285_v19  ;;  %v4489_v19 = vpack.c.bf16 %v2740_v42, %v2737_v20 }
 0x152   :  { %v2807_v58 = vand.u32 4294901760, %v2806_v37 }
 0x153   :  { %4451 = vmatpush3.bf16.msra.mxu0 %v4450_v46 }
 0x154   :  { %4475 = vmatpush3.bf16.msra.mxu1 %v5660_v60  ;;  %4453 = vmatprep.subr.bf16.mxu0 %v4452_v61 }
 0x155   :  { %4477 = vmatprep.subr.bf16.mxu1 %v5674_v44  ;;  %v4592_v44 = vmov 0.0  }
 0x156   :  { %v3359_v13 = vpop.f32.mrb[2].mxu1 }
 0x157   :  { %v3360_v48 = vpop.f32.mrb[3].mxu1  ;;  %4455 = vmatpush3.bf16.msra.mxu0 %v4454_v38 }
 0x158   :  { %v3361_v0 = vadd.f32 %v3360_v48, %v3359_v13  ;;  %4479 = vmatpush3.bf16.msra.mxu1 %v5691_v56  ;;  %4488 = vmatprep.subr.bf16.mxu0 %v4590_v17  ;;  %v4492_v56 = vpack.c.bf16 %v2825_v54, %v2818_v14 }
 0x159   :  { %4481 = vmatprep.subr.bf16.mxu1 %v5716_v22  ;;  %v4501_v22 = vpack.c.bf16 %v2823_v23, %v2816_v27 }
 0x15a   :  { %v737_v60 = vadd.f32 %v3361_v0, %v629_v18  ;;  %2627 = vmatmul.mubr.f32.vlgmr.msra.gmra.mrb[16].mxu0 %v5737_v15 }
 0x15b   :  { %4490 = vmatpush3.bf16.msra.mxu0 %v4489_v19  ;;  %3874 = vmatprep.mubr.msk.f32.mxu0 %vm4591_vm1, %v4592_v44 }
 0x15c   :  { %4483 = vmatpush3.bf16.msra.mxu1 %v5795_v40  ;;  %4494 = vmatprep.subr.bf16.mxu0 %v4590_v17 }
 0x15d   :  { %4485 = vmatprep.subr.bf16.mxu1 %v5797_v62 }
 0x15e   :  { %3875 = vmatmul.mubr.f32.vlgmr.msra.gmra.mrb[18].mxu0 %v2807_v58 }
 0x15f   :  { %4496 = vmatpush3.bf16.msra.mxu0 %v4495_v12  ;;  %3888 = vmatprep.mubr.msk.f32.mxu0 %vm4591_vm1, %v4592_v44 }
 0x160   :  { %4487 = vmatpush3.bf16.msra.mxu1 %v5820_v55  ;;  %4500 = vmatprep.subr.bf16.mxu0 %v4590_v17 }
 0x161   :  { %4491 = vmatprep.subr.bf16.mxu1 %v4590_v17 }
 0x162   :  { %3889 = vmatmul.mubr.f32.vlgmr.msra.gmra.mrb[20].mxu0 %v5949_v33 }
 0x163   :  { %2731 = vmatmul.mubr.f32.vlgmr.msra.gmra.mrb[16].mxu1 %v5737_v15  ;;  %4502 = vmatpush3.bf16.msra.mxu0 %v4501_v22 }
 0x164   :  { %4493 = vmatpush3.bf16.msra.mxu1 %v4492_v56  ;;  %3881 = vmatprep.mubr.msk.f32.mxu1 %vm4591_vm1, %v4592_v44 }
 0x165   :  { %4497 = vmatprep.subr.bf16.mxu1 %v4590_v17  ;;  %3902 = vmatprep.mubr.msk.f32.mxu0 %vm4591_vm1, %v4592_v44 }
 0x166   :  { %3903 = vmatmul.mubr.f32.vlgmr.msra.gmra.mrb[22].mxu0 %v5936_v30 }
 0x167   :  { %3882 = vmatmul.mubr.f32.vlgmr.msra.gmra.mrb[18].mxu1 %v5936_v30 }
 0x168   :  { %4499 = vmatpush3.bf16.msra.mxu1 %v4489_v19  ;;  %3895 = vmatprep.mubr.msk.f32.mxu1 %vm4591_vm1, %v4592_v44 }
 0x169   :  { %4503 = vmatprep.subr.bf16.mxu1 %v4590_v17 }
 0x16b   :  { %3896 = vmatmul.mubr.f32.vlgmr.msra.gmra.mrb[20].mxu1 %v2805_v36 }
 0x16c   :  { %4505 = vmatpush3.bf16.msra.mxu1 %v4489_v19  ;;  %3909 = vmatprep.mubr.msk.f32.mxu1 %vm4591_vm1, %v4592_v44 }
 0x16d   :  { %v3394_v15 = vpop.f32.mrb[4].mxu0 }
 0x16e   :  { %v3395_v40 = vpop.f32.mrb[5].mxu0 }
 0x16f   :  { %v3396_v62 = vadd.f32 %v3395_v40, %v3394_v15  ;;  %3910 = vmatmul.mubr.f32.vlgmr.msra.gmra.mrb[22].mxu1 %v5936_v30 }
 0x171   :  { %v905_v55 = vadd.f32 %v3396_v62, %v737_v60 }
 0x176   :  { %v3429_v52 = vpop.f32.mrb[4].mxu1 }
 0x177   :  { %v3430_v16 = vpop.f32.mrb[5].mxu1 }
 0x178   :  { %v3431_v35 = vadd.f32 %v3430_v16, %v3429_v52 }
 0x17a   :  { %v1009_v29 = vadd.f32 %v3431_v35, %v905_v55 }
 0x18d   :  { %v3464_v24 = vpop.f32.mrb[6].mxu0 }
 0x18e   :  { %v3465_v43 = vpop.f32.mrb[7].mxu0 }
 0x18f   :  { %v3466_v10 = vadd.f32 %v3465_v43, %v3464_v24  ;;  %v3221_v43 = vld [vmem:[%s6003_s2] ss:$0 sm:$0xff] }
 0x191   :  { %v1121_v2 = vadd.f32 %v3466_v10, %v1009_v29 }
 0x196   :  { %v3499_v11 = vpop.f32.mrb[6].mxu1 }
 0x197   :  { %v3500_v53 = vpop.f32.mrb[7].mxu1 }
 0x198   :  { %v3501_v45 = vadd.f32 %v3500_v53, %v3499_v11 }
 0x19a   :  { %v1353_v47 = vadd.f32 %v3501_v45, %v1121_v2 }
 0x1ad   :  { %v3534_v3 = vpop.f32.mrb[8].mxu0 }
 0x1ae   :  { %v3535_v32 = vpop.f32.mrb[9].mxu0 }
 0x1af   :  { %v3536_v63 = vadd.f32 %v3535_v32, %v3534_v3 }
 0x1b1   :  { %v1491_v25 = vadd.f32 %v3536_v63, %v1353_v47 }
 0x1b6   :  { %v3569_v21 = vpop.f32.mrb[8].mxu1 }
 0x1b7   :  { %v3570_v9 = vpop.f32.mrb[9].mxu1 }
 0x1b8   :  { %v3571_v30 = vadd.f32 %v3570_v9, %v3569_v21 }
 0x1ba   :  { %v1599_v51 = vadd.f32 %v3571_v30, %v1491_v25 }
 0x1cd   :  { %v3604_v20 = vpop.f32.mrb[10].mxu0 }
 0x1ce   :  { %v3605_v50 = vpop.f32.mrb[11].mxu0 }
 0x1cf   :  { %v3606_v41 = vadd.f32 %v3605_v50, %v3604_v20 }
 0x1d1   :  { %v1767_v5 = vadd.f32 %v3606_v41, %v1599_v51 }
 0x1d6   :  { %v3639_v42 = vpop.f32.mrb[10].mxu1 }
 0x1d7   :  { %v3640_v7 = vpop.f32.mrb[11].mxu1 }
 0x1d8   :  { %v3641_v57 = vadd.f32 %v3640_v7, %v3639_v42 }
 0x1da   :  { %v1871_v33 = vadd.f32 %v3641_v57, %v1767_v5 }
 0x1ed   :  { %v3674_v28 = vpop.f32.mrb[12].mxu0 }
 0x1ee   :  { %v3675_v34 = vpop.f32.mrb[13].mxu0 }
 0x1ef   :  { %v3676_v59 = vadd.f32 %v3675_v34, %v3674_v28 }
 0x1f1   :  { %v1983_v46 = vadd.f32 %v3676_v59, %v1871_v33 }
 0x1f6   :  { %v3709_v4 = vpop.f32.mrb[12].mxu1 }
 0x1f7   :  { %v3710_v6 = vpop.f32.mrb[13].mxu1 }
 0x1f8   :  { %v3711_v31 = vadd.f32 %v3710_v6, %v3709_v4 }
 0x1fa   :  { %v2215_v61 = vadd.f32 %v3711_v31, %v1983_v46 }
 0x20d   :  { %v3744_v26 = vpop.f32.mrb[14].mxu0 }
 0x20e   :  { %v3745_v18 = vpop.f32.mrb[15].mxu0 }
 0x20f   :  { %v3746_v36 = vadd.f32 %v3745_v18, %v3744_v26 }
 0x211   :  { %v2353_v49 = vadd.f32 %v3746_v36, %v2215_v61 }
 0x216   :  { %v3779_v39 = vpop.f32.mrb[14].mxu1 }
 0x217   :  { %v3780_v38 = vpop.f32.mrb[15].mxu1 }
 0x218   :  { %v3781_v27 = vadd.f32 %v3780_v38, %v3779_v39 }
 0x21a   :  { %v2461_v23 = vadd.f32 %v3781_v27, %v2353_v49 }
 0x22d   :  { %v3814_v13 = vpop.f32.mrb[16].mxu0 }
 0x22e   :  { %v3815_v37 = vpop.f32.mrb[17].mxu0 }
 0x22f   :  { %v3816_v48 = vadd.f32 %v3815_v37, %v3814_v13 }
 0x231   :  { %v2629_v19 = vadd.f32 %v3816_v48, %v2461_v23  ;;  %v2809_v8 = vpop.f32.mrb[18].mxu0 }
 0x232   :  { %v3876_v0 = vpop.f32.mrb[19].mxu0 }
 0x235   :  { %v2966_v17 = vpop.f32.mrb[20].mxu0 }
 0x236   :  { %v3849_v1 = vpop.f32.mrb[16].mxu1  ;;  %v3890_v60 = vpop.f32.mrb[21].mxu0 }
 0x237   :  { %v3850_v58 = vpop.f32.mrb[17].mxu1 }
 0x238   :  { %v3851_v44 = vadd.f32 %v3850_v58, %v3849_v1 }
 0x239   :  { %v3118_v12 = vpop.f32.mrb[22].mxu0 }
 0x23a   :  { %v2733_v14 = vadd.f32 %v3851_v44, %v2629_v19  ;;  %v2890_v54 = vpop.f32.mrb[18].mxu1  ;;  %v3904_v22 = vpop.f32.mrb[23].mxu0 }
 0x23b   :  { %v3883_v56 = vpop.f32.mrb[19].mxu1 }
 0x23c   :  { %v2810_v15 = vadd.f32 %v2809_v8, %v2733_v14 }
 0x23e   :  { %v2891_v40 = vadd.f32 %v2890_v54, %v2810_v15  ;;  %v3041_v62 = vpop.f32.mrb[20].mxu1 }
 0x23f   :  { %v3897_v55 = vpop.f32.mrb[21].mxu1 }
 0x240   :  { %v2967_v52 = vadd.f32 %v2966_v17, %v2891_v40 }
 0x242   :  { %v3042_v16 = vadd.f32 %v3041_v62, %v2967_v52  ;;  %v3191_v35 = vpop.f32.mrb[22].mxu1 }
 0x243   :  { %v3911_v29 = vpop.f32.mrb[23].mxu1 }
 0x244   :  { %v3119_v24 = vadd.f32 %v3118_v12, %v3042_v16 }
 0x246   :  { %v3192_v10 = vadd.f32 %v3191_v35, %v3119_v24 }
 0x248   :  { %v3202_v2 = vadd.f32 %v3221_v43, %v3192_v10 }
 0x24a   :  { %3204 = vst.msk [vmem:[#allocation7] sm:$0xff] %vm3203_vm2, %v3202_v2 }
 0x24b   :  { %4569 = shalt.err (!%p4566_p6)
}
 0x24c   :  { %s4570_s16 = scalar_lea.hbm %s6004_s3, 128 }
 0x24d   :  { %p4571_p7 = scmp.ne.s32.totalorder %s6004_s3, %s4570_s16  ;;  %p4574_p8 = scmp.lt.u32.totalorder %s4570_s16, %s6004_s3 }
 0x24f   :  { %p4576_p9 = pnand %p4574_p8, %p4571_p7 }
 0x251   :  { %4579 = shalt.err (!%p4576_p9)
}
 0x252   :  { %3214 = dma.vmem_to_hbm [thread:$0]  %s3212_s12, 128, %s6004_s3, [#allocation4]  }
 0x253   :  { %4584 = dma.done.wait [#allocation4], 128  }
 0x254   :  { %4585 = vsyncadd [#allocation4], 4294967168 }
 0x255   :  { %3218 = vsyncpa [#allocation3], 1 }
 0x256   :  { %3219 = vsyncpa [#allocation6], 1 }
 0x257   :  { %3220 = vsyncpa [#allocation4], 1 }

</bundles_post_ra>
